<compile_context>
chip_gen: v7x
topology: tpu7x:2x2x1
jax: 0.10.0
libtpu: 0.0.40
codegen_flags: <defaults>
</compile_context>

<pallas_src>
import collections
import functools

import jax
import jax.numpy as jnp
from jax.experimental import pallas as pl
from jax.experimental.pallas import tpu as pltpu

CP = 128          # lane width for OUTPUT channel groups (real channel counts <= 32 here)
BN_EPS = 1e-5


def _round_up(x, m):
    return (x + m - 1) // m * m


# --------------------------------------------------------------------------------------
# Fused layer kernel:   out = act(BatchNorm(A @ W))   in a single pallas_call.
#   A : (Mp, Kp)            bf16   im2col patches (K compacted to real Cin, zero-padded)
#   W : (Kp, n_groups*CP)   bf16   pre-assembled weight slab (zero rows beyond real K)
#   g, b : (1, CP)          f32    BN gamma/beta (padded output lanes are ZERO -> padded
#                                  channels stay exactly 0 through BN and activations)
#   out : (Mp, n_groups*CP) bf16
# For the stride-2 ConvTranspose the n_groups=4 column groups are the 4 output sub-pixel
# phases of the SAME Cout channels, so BN statistics reduce over rows AND groups.
# Zero-padded rows (Mp > m_rows) contribute nothing to the mean (they are zero) and are
# explicitly masked out of the variance sum.
# --------------------------------------------------------------------------------------
def _fused_layer_kernel(a_ref, w_ref, g_ref, b_ref, o_ref, *,
                        n_groups, cp, use_bn, act, m_rows, inv_count):
    y = jnp.dot(a_ref[...], w_ref[...], preferred_element_type=jnp.float32)
    groups = [y[:, p * cp:(p + 1) * cp] for p in range(n_groups)]

    scale = shift = None
    if use_bn:
        # mean: padded rows are exactly zero, so a plain sum with the true count is exact.
        s = groups[0]
        for yp in groups[1:]:
            s = s + yp
        mean = jnp.sum(s, axis=0, keepdims=True) * inv_count
        # variance: two-pass (centered) form; mask out zero-padded rows.
        mp = y.shape[0]
        valid = jax.lax.broadcasted_iota(jnp.int32, (mp, 1), 0) < m_rows
        ss = jnp.zeros((1, cp), jnp.float32)
        for yp in groups:
            d = jnp.where(valid, yp - mean, 0.0)
            ss = ss + jnp.sum(d * d, axis=0, keepdims=True)
        var = jnp.maximum(ss * inv_count, 0.0)
        scale = g_ref[...] * jax.lax.rsqrt(var + BN_EPS)
        shift = b_ref[...] - mean * scale

    for p, yp in enumerate(groups):
        if use_bn:
            yp = yp * scale + shift
        if act == "relu":
            yp = jnp.maximum(yp, 0.0)
        elif act == "leaky":
            yp = jnp.where(yp > 0.0, yp, 0.2 * yp)
        elif act == "tanh":
            yp = jnp.tanh(yp)
        o_ref[:, p * cp:(p + 1) * cp] = yp.astype(o_ref.dtype)


def fused_layer(A, wm, gamma, beta, *, n_groups, use_bn, act):
    """A:(M,K) bf16 -> act(BN(A @ wm)) : (M, n_groups*CP) bf16, one VMEM-resident block."""
    M, K = A.shape
    Kp, NC = wm.shape
    assert K <= Kp and NC % n_groups == 0
    cp = NC // n_groups
    Mp = _round_up(M, 16)                                   # bf16 sublane tile is 16
    A = jnp.pad(A, ((0, Mp - M), (0, Kp - K)))               # pad K once, zeros are inert
    kern = functools.partial(
        _fused_layer_kernel, n_groups=n_groups, cp=cp, use_bn=use_bn, act=act,
        m_rows=M, inv_count=1.0 / float(n_groups * M))
    out = pl.pallas_call(
        kern,
        out_shape=jax.ShapeDtypeStruct((Mp, NC), jnp.bfloat16),
        compiler_params=pltpu.CompilerParams(vmem_limit_bytes=32 * 1024 * 1024),
    )(A, wm, gamma, beta)
    return out[:M]


# --------------------------------------------------------------------------------------
# Layer glue (runs under jit; activations stay bf16 NHWC with CP output lanes).
# --------------------------------------------------------------------------------------
LayerCfg = collections.namedtuple(
    "LayerCfg", ["kind", "ksize", "stride", "pad", "cin", "use_bn", "act"])
# kind: "conv"   -> ordinary conv (also used for the stride-1 ConvTranspose, whose
#                   weights were pre-flipped into conv layout at build time)
#       "convt2" -> ConvTranspose2d(k=4, stride=2, pad=1) via 4-phase decomposition


def _run_layer(x, cfg, prm):
    N, H, W, _ = x.shape
    cin = cfg.cin
    if cfg.kind == "conv":
        k, s, pad = cfg.ksize, cfg.stride, cfg.pad
        xp = jnp.pad(x, ((0, 0), (pad, pad), (pad, pad), (0, 0))) if pad else x
        OH = (H + 2 * pad - k) // s + 1
        OW = (W + 2 * pad - k) // s + 1
        patches = [xp[:, kh:kh + (OH - 1) * s + 1:s, kw:kw + (OW - 1) * s + 1:s, :cin]
                   for kh in range(k) for kw in range(k)]
        A = jnp.concatenate(patches, axis=-1).reshape(N * OH * OW, k * k * cin)
        out = fused_layer(A, prm["wm"], prm["gamma"], prm["beta"], n_groups=1,
                          use_bn=cfg.use_bn, act=cfg.act)
        return out.reshape(N, OH, OW, CP)

    # "convt2": 4x4 / stride 2 / pad 1 transposed conv, sub-pixel phase formulation.
    # Output row 2q+py reads padded-input rows q+dy (dy in {0,1,2}); same for columns.
    xp = jnp.pad(x, ((0, 0), (1, 1), (1, 1), (0, 0)))
    patches = [xp[:, dy:dy + H, dx:dx + W, :cin] for dy in range(3) for dx in range(3)]
    A = jnp.concatenate(patches, axis=-1).reshape(N * H * W, 9 * cin)
    out = fused_layer(A, prm["wm"], prm["gamma"], prm["beta"], n_groups=4,
                      use_bn=cfg.use_bn, act=cfg.act)
    out = out.reshape(N, H, W, 2, 2, CP).transpose(0, 1, 3, 2, 4, 5)
    return out.reshape(N, 2 * H, 2 * W, CP)


def _run_stack(x, cfgs, ps):
    for cfg, prm in zip(cfgs, ps):
        x = _run_layer(x, cfg, prm)
    return x


def _netg_forward(cfgs, latent_size, num_channels, params, x_nchw):
    cfg_e1, cfg_d, cfg_e2 = cfgs
    x = jnp.transpose(x_nchw, (0, 2, 3, 1)).astype(jnp.bfloat16)   # NCHW -> NHWC, bf16 once
    lat_i = _run_stack(x, cfg_e1, params["encoder1"])               # (N,1,1,CP) bf16
    gen = _run_stack(lat_i, cfg_d, params["decoder"])               # (N,H,W,CP) bf16
    lat_o = _run_stack(gen, cfg_e2, params["encoder2"])             # (N,1,1,CP) bf16
    gen_nchw = jnp.transpose(gen[..., :num_channels], (0, 3, 1, 2)).astype(jnp.float32)
    lat_i_nchw = jnp.transpose(lat_i[..., :latent_size], (0, 3, 1, 2)).astype(jnp.float32)
    lat_o_nchw = jnp.transpose(lat_o[..., :latent_size], (0, 3, 1, 2)).astype(jnp.float32)
    return gen_nchw, lat_i_nchw, lat_o_nchw


# --------------------------------------------------------------------------------------
# Parameter construction (padding / flipping / reshaping / bf16 casting all done ONCE).
# --------------------------------------------------------------------------------------
def _w_init(key, shape):
    return 0.02 * jax.random.normal(key, shape, dtype=jnp.float32)


def _bn_pad(C, use_bn):
    # Padded output lanes MUST stay zero so padded channels remain 0 through BN + act.
    g = jnp.zeros((1, CP), jnp.float32)
    if use_bn:
        g = g.at[0, :C].set(1.0)
    b = jnp.zeros((1, CP), jnp.float32)
    return g, b


def _conv_wm(w_oihw):
    """Conv2d weight (Cout,Cin,KH,KW) -> K-compacted bf16 slab (round_up(KH*KW*Cin,128), CP)."""
    Cout, Cin, KH, KW = w_oihw.shape
    wt = jnp.transpose(w_oihw, (2, 3, 1, 0))                         # (KH,KW,Cin,Cout)
    wm = jnp.zeros((KH, KW, Cin, CP), jnp.float32).at[..., :Cout].set(wt)
    K = KH * KW * Cin
    Kp = _round_up(K, 128)
    wm = jnp.pad(wm.reshape(K, CP), ((0, Kp - K), (0, 0)))
    return wm.astype(jnp.bfloat16)


def _convt_s1_wm(w_iohw):
    """ConvTranspose2d(stride=1) weight -> equivalent flipped ordinary-conv slab."""
    w_conv = jnp.transpose(w_iohw[:, :, ::-1, ::-1], (1, 0, 2, 3))   # (Cout,Cin,KH,KW)
    return _conv_wm(w_conv)


# ConvTranspose2d(k=4, s=2, p=1):  oy = 2*iy + ky - 1  =>  even output rows use kernel
# rows {3,1}, odd rows use {2,0}; table maps phase -> {padded-patch offset: kernel index}.
_CT2_TAPS = {0: {0: 3, 1: 1}, 1: {1: 2, 2: 0}}


def _convt_s2_wm(w_iohw):
    """ConvT(4, s=2, p=1) weight (Cin,Cout,4,4) -> (round_up(9*Cin,128), 4*CP) bf16."""
    Cin, Cout, KH, KW = w_iohw.shape
    assert KH == 4 and KW == 4
    wm = jnp.zeros((3, 3, Cin, 2, 2, CP), jnp.float32)
    for py in (0, 1):
        for px in (0, 1):
            for dy, ky in _CT2_TAPS[py].items():
                for dx, kx in _CT2_TAPS[px].items():
                    wm = wm.at[dy, dx, :, py, px, :Cout].set(w_iohw[:, :, ky, kx])
    K = 9 * Cin
    Kp = _round_up(K, 128)
    wm = jnp.pad(wm.reshape(K, 4 * CP), ((0, Kp - K), (0, 0)))
    return wm.astype(jnp.bfloat16)


def make_encoder(key, image_size, latent_size, num_channels, ndf, n_extra_layers=0):
    assert image_size % 16 == 0
    keys = iter(jax.random.split(key, 32))
    cfgs, ps, ref = [], [], []

    def add_conv(cin, cout, k, s, pad, use_bn, act):
        w = _w_init(next(keys), (cout, cin, k, k))
        g, b = _bn_pad(cout, use_bn)
        cfgs.append(LayerCfg("conv", k, s, pad, cin, use_bn, act))
        ps.append({"wm": _conv_wm(w), "gamma": g, "beta": b})
        ref.append(("conv", w, s, pad, use_bn, act))

    add_conv(num_channels, ndf, 4, 2, 1, False, "leaky")
    csize, cndf = image_size // 2, ndf
    for _ in range(n_extra_layers):
        add_conv(cndf, cndf, 3, 1, 1, True, "leaky")
    while csize > 4:
        add_conv(cndf, cndf * 2, 4, 2, 1, True, "leaky")
        cndf *= 2
        csize //= 2
    add_conv(cndf, latent_size, 4, 1, 0, False, "none")
    return tuple(cfgs), ps, ref


def make_decoder(key, image_size, latent_size, num_channels, ngf, n_extra_layers=0):
    assert image_size % 16 == 0
    keys = iter(jax.random.split(key, 32))
    cfgs, ps, ref = [], [], []

    cngf, tisize = ngf // 2, 4
    while tisize != image_size:
        cngf *= 2
        tisize *= 2

    # Initial ConvTranspose2d(latent, cngf, 4, 1, 0): stride 1 => exactly an ordinary conv
    # with spatially flipped weights and pad=3 (input is 1x1, so this path stays tiny).
    w = _w_init(next(keys), (latent_size, cngf, 4, 4))
    g, b = _bn_pad(cngf, True)
    cfgs.append(LayerCfg("conv", 4, 1, 3, latent_size, True, "relu"))
    ps.append({"wm": _convt_s1_wm(w), "gamma": g, "beta": b})
    ref.append(("convT", w, 1, 0, True, "relu"))

    csize = 4
    while csize < image_size // 2:
        w = _w_init(next(keys), (cngf, cngf // 2, 4, 4))
        g, b = _bn_pad(cngf // 2, True)
        cfgs.append(LayerCfg("convt2", 4, 2, 1, cngf, True, "relu"))
        ps.append({"wm": _convt_s2_wm(w), "gamma": g, "beta": b})
        ref.append(("convT", w, 2, 1, True, "relu"))
        cngf //= 2
        csize *= 2

    for _ in range(n_extra_layers):
        w = _w_init(next(keys), (cngf, cngf, 3, 3))
        g, b = _bn_pad(cngf, True)
        cfgs.append(LayerCfg("conv", 3, 1, 1, cngf, True, "relu"))
        ps.append({"wm": _conv_wm(w), "gamma": g, "beta": b})
        ref.append(("conv", w, 1, 1, True, "relu"))

    w = _w_init(next(keys), (cngf, num_channels, 4, 4))
    g, b = _bn_pad(num_channels, False)
    cfgs.append(LayerCfg("convt2", 4, 2, 1, cngf, False, "tanh"))
    ps.append({"wm": _convt_s2_wm(w), "gamma": g, "beta": b})
    ref.append(("convT", w, 2, 1, False, "tanh"))
    return tuple(cfgs), ps, ref


# --------------------------------------------------------------------------------------
# Pure-JAX f32 reference (same training-mode BN semantics) for numerical validation.
# --------------------------------------------------------------------------------------
def _ref_conv(x, w, stride, pad):               # x NHWC, w (Cout,Cin,KH,KW)
    N, H, W, Cin = x.shape
    Cout, _, KH, KW = w.shape
    xp = jnp.pad(x, ((0, 0), (pad, pad), (pad, pad), (0, 0)))
    OH = (H + 2 * pad - KH) // stride + 1
    OW = (W + 2 * pad - KW) // stride + 1
    cols = [xp[:, kh:kh + (OH - 1) * stride + 1:stride,
               kw:kw + (OW - 1) * stride + 1:stride, :]
            for kh in range(KH) for kw in range(KW)]
    A = jnp.concatenate(cols, axis=-1).reshape(N * OH * OW, KH * KW * Cin)
    Wm = jnp.transpose(w, (2, 3, 1, 0)).reshape(KH * KW * Cin, Cout)
    return (A @ Wm).reshape(N, OH, OW, Cout)


def _ref_convT(x, w, stride, pad):              # w (Cin,Cout,KH,KW); dilation + flipped conv
    N, H, W, Cin = x.shape
    _, Cout, KH, KW = w.shape
    if stride > 1:
        xd = jnp.zeros((N, (H - 1) * stride + 1, (W - 1) * stride + 1, Cin),
                       x.dtype).at[:, ::stride, ::stride, :].set(x)
    else:
        xd = x
    w_conv = jnp.transpose(w[:, :, ::-1, ::-1], (1, 0, 2, 3))
    return _ref_conv(xd, w_conv, 1, KH - 1 - pad)


def _ref_stack(x, ref_layers):
    for kind, w, stride, pad, use_bn, act in ref_layers:
        x = _ref_conv(x, w, stride, pad) if kind == "conv" else _ref_convT(x, w, stride, pad)
        if use_bn:
            mean = jnp.mean(x, axis=(0, 1, 2), keepdims=True)
            var = jnp.mean((x - mean) ** 2, axis=(0, 1, 2), keepdims=True)
            x = (x - mean) * jax.lax.rsqrt(var + BN_EPS)      # gamma=1, beta=0 at init
        if act == "relu":
            x = jnp.maximum(x, 0.0)
        elif act == "leaky":
            x = jnp.where(x > 0.0, x, 0.2 * x)
        elif act == "tanh":
            x = jnp.tanh(x)
    return x


def _ref_netg(refs, x_nchw):
    r_e1, r_d, r_e2 = refs
    x = jnp.transpose(x_nchw, (0, 2, 3, 1))
    lat_i = _ref_stack(x, r_e1)
    gen = _ref_stack(lat_i, r_d)
    lat_o = _ref_stack(gen, r_e2)
    return (jnp.transpose(gen, (0, 3, 1, 2)),
            jnp.transpose(lat_i, (0, 3, 1, 2)),
            jnp.transpose(lat_o, (0, 3, 1, 2)))


# --------------------------------------------------------------------------------------
if __name__ == "__main__":
    # opt: im_size=16, latent_size=32, num_channels=3, ngf=8, ngpu=1, extralayers=0
    im_size, latent_size, num_channels, ngf, n_extra = 16, 32, 3, 8, 0
    batch = 2

    key = jax.random.PRNGKey(0)
    k_e1, k_d, k_e2, k_x = jax.random.split(key, 4)
    cfg_e1, p_e1, r_e1 = make_encoder(k_e1, im_size, latent_size, num_channels, ngf, n_extra)
    cfg_d, p_d, r_d = make_decoder(k_d, im_size, latent_size, num_channels, ngf, n_extra)
    cfg_e2, p_e2, r_e2 = make_encoder(k_e2, im_size, latent_size, num_channels, ngf, n_extra)

    params = {"encoder1": p_e1, "decoder": p_d, "encoder2": p_e2}
    netg = jax.jit(functools.partial(
        _netg_forward, (cfg_e1, cfg_d, cfg_e2), latent_size, num_channels))

    x = jax.random.normal(k_x, (batch, num_channels, im_size, im_size), dtype=jnp.float32)

    gen_imag, latent_i, latent_o = netg(params, x)
    jax.block_until_ready((gen_imag, latent_i, latent_o))

    assert gen_imag.shape == (batch, num_channels, im_size, im_size)
    assert latent_i.shape == (batch, latent_size, 1, 1)
    assert latent_o.shape == (batch, latent_size, 1, 1)
    assert bool(jnp.all(jnp.isfinite(gen_imag)))
    assert bool(jnp.all(jnp.isfinite(latent_i)))
    assert bool(jnp.all(jnp.isfinite(latent_o)))

    # Numerical check against the pure-JAX f32 reference (tolerance covers bf16 MXU inputs
    # and bf16 activation storage).
    ref_gen, ref_li, ref_lo = _ref_netg((r_e1, r_d, r_e2), x)
    assert float(jnp.max(jnp.abs(gen_imag - ref_gen))) < 1e-1
    assert float(jnp.max(jnp.abs(latent_i - ref_li))) < 1e-1
    assert float(jnp.max(jnp.abs(latent_o - ref_lo))) < 1e-1

    print("KERNEL_OK")
</pallas_src>

<mosaic_0001>
module attributes {stable_mosaic.version = 11 : i64} {
  func.func @_fused_layer_kernel(%arg0: memref<128x128xbf16, #tpu.memory_space<vmem>>, %arg1: memref<128x128xbf16, #tpu.memory_space<vmem>>, %arg2: memref<1x128xf32, #tpu.memory_space<vmem>>, %arg3: memref<1x128xf32, #tpu.memory_space<vmem>>, %arg4: memref<128x128xbf16, #tpu.memory_space<vmem>>) attributes {dimension_semantics = [], scalar_prefetch = 0 : i64, scratch_operands = 0 : i64, tpu.core_type = #tpu.core_type<tc>} {
    %c0 = arith.constant 0 : index
    %c0_0 = arith.constant 0 : index
    %0 = vector.load %arg0[%c0, %c0_0] : memref<128x128xbf16, #tpu.memory_space<vmem>>, vector<128x128xbf16>
    %c0_1 = arith.constant 0 : index
    %c0_2 = arith.constant 0 : index
    %1 = vector.load %arg1[%c0_1, %c0_2] : memref<128x128xbf16, #tpu.memory_space<vmem>>, vector<128x128xbf16>
    %cst = arith.constant dense<0.000000e+00> : vector<128x128xf32>
    %2 = tpu.matmul %0, %1, %cst {dimension_numbers = #tpu.dot_dimension_numbers<[1], [0], [0], [1], [0, 0, 1, 1], [], []>} : vector<128x128xbf16>, vector<128x128xbf16>, vector<128x128xf32> -> vector<128x128xf32>
    %cst_3 = arith.constant 0.000000e+00 : f32
    %3 = vector.broadcast %cst_3 : f32 to vector<128x128xf32>
    %4 = arith.cmpf ogt, %2, %3 : vector<128x128xf32>
    %cst_4 = arith.constant 2.000000e-01 : f32
    %5 = vector.broadcast %cst_4 : f32 to vector<128x128xf32>
    %6 = arith.mulf %5, %2 : vector<128x128xf32>
    %7 = arith.select %4, %2, %6 : vector<128x128xi1>, vector<128x128xf32>
    %8 = arith.truncf %7 : vector<128x128xf32> to vector<128x128xbf16>
    %c0_5 = arith.constant 0 : index
    %c0_6 = arith.constant 0 : index
    %9 = vector.load %arg4[%c0_5, %c0_6] : memref<128x128xbf16, #tpu.memory_space<vmem>>, vector<128x128xbf16>
    tpu.vector_store %arg4[%c0_5, %c0_6], %8 {strides = array<i32>} : memref<128x128xbf16, #tpu.memory_space<vmem>>, vector<128x128xbf16>,
    return
  }
}

module attributes {stable_mosaic.version = 11 : i64} {
  func.func @_fused_layer_kernel(%arg0: memref<32x128xbf16, #tpu.memory_space<vmem>>, %arg1: memref<128x128xbf16, #tpu.memory_space<vmem>>, %arg2: memref<1x128xf32, #tpu.memory_space<vmem>>, %arg3: memref<1x128xf32, #tpu.memory_space<vmem>>, %arg4: memref<32x128xbf16, #tpu.memory_space<vmem>>) attributes {dimension_semantics = [], scalar_prefetch = 0 : i64, scratch_operands = 0 : i64, tpu.core_type = #tpu.core_type<tc>} {
    %c0 = arith.constant 0 : index
    %c0_0 = arith.constant 0 : index
    %0 = vector.load %arg0[%c0, %c0_0] : memref<32x128xbf16, #tpu.memory_space<vmem>>, vector<32x128xbf16>
    %c0_1 = arith.constant 0 : index
    %c0_2 = arith.constant 0 : index
    %1 = vector.load %arg1[%c0_1, %c0_2] : memref<128x128xbf16, #tpu.memory_space<vmem>>, vector<128x128xbf16>
    %cst = arith.constant dense<0.000000e+00> : vector<32x128xf32>
    %2 = tpu.matmul %0, %1, %cst {dimension_numbers = #tpu.dot_dimension_numbers<[1], [0], [0], [1], [0, 0, 1, 1], [], []>} : vector<32x128xbf16>, vector<128x128xbf16>, vector<32x128xf32> -> vector<32x128xf32>
    %cst_3 = arith.constant dense<0.000000e+00> : vector<128xf32>
    %3 = vector.multi_reduction <add>, %2, %cst_3 [0] : vector<32x128xf32> to vector<128xf32>
    %4 = vector.shape_cast %3 : vector<128xf32> to vector<1x128xf32>
    %cst_4 = arith.constant 3.125000e-02 : f32
    %5 = vector.broadcast %cst_4 : f32 to vector<1x128xf32>
    %6 = arith.mulf %4, %5 : vector<1x128xf32>
    %7 = tpu.iota {dimensions = array<i32: 0>} : vector<32x1xi32>
    %c32_i32 = arith.constant 32 : i32
    %8 = vector.broadcast %c32_i32 : i32 to vector<32x1xi32>
    %9 = arith.cmpi slt, %7, %8 : vector<32x1xi32>
    %cst_5 = arith.constant 0.000000e+00 : f32
    %10 = vector.broadcast %cst_5 : f32 to vector<1x128xf32>
    %11 = vector.broadcast %6 : vector<1x128xf32> to vector<32x128xf32>
    %12 = arith.subf %2, %11 : vector<32x128xf32>
    %cst_6 = arith.constant 0.000000e+00 : f32
    %13 = vector.shape_cast %9 : vector<32x1xi1> to vector<32x1xi1>
    %14 = vector.broadcast %13 : vector<32x1xi1> to vector<32x128xi1>
    %15 = vector.broadcast %cst_6 : f32 to vector<32x128xf32>
    %16 = arith.select %14, %12, %15 : vector<32x128xi1>, vector<32x128xf32>
    %17 = arith.mulf %16, %16 : vector<32x128xf32>
    %cst_7 = arith.constant dense<0.000000e+00> : vector<128xf32>
    %18 = vector.multi_reduction <add>, %17, %cst_7 [0] : vector<32x128xf32> to vector<128xf32>
    %19 = vector.shape_cast %18 : vector<128xf32> to vector<1x128xf32>
    %20 = arith.addf %10, %19 : vector<1x128xf32>
    %cst_8 = arith.constant 3.125000e-02 : f32
    %21 = vector.broadcast %cst_8 : f32 to vector<1x128xf32>
    %22 = arith.mulf %20, %21 : vector<1x128xf32>
    %cst_9 = arith.constant 0.000000e+00 : f32
    %23 = vector.broadcast %cst_9 : f32 to vector<1x128xf32>
    %24 = arith.maximumf %22, %23 : vector<1x128xf32>
    %c0_10 = arith.constant 0 : index
    %c0_11 = arith.constant 0 : index
    %25 = vector.load %arg2[%c0_10, %c0_11] : memref<1x128xf32, #tpu.memory_space<vmem>>, vector<1x128xf32>
    %cst_12 = arith.constant 9.99999974E-6 : f32
    %26 = vector.broadcast %cst_12 : f32 to vector<1x128xf32>
    %27 = arith.addf %24, %26 : vector<1x128xf32>
    %28 = math.rsqrt %27 : vector<1x128xf32>
    %29 = arith.mulf %25, %28 : vector<1x128xf32>
    %c0_13 = arith.constant 0 : index
    %c0_14 = arith.constant 0 : index
    %30 = vector.load %arg3[%c0_13, %c0_14] : memref<1x128xf32, #tpu.memory_space<vmem>>, vector<1x128xf32>
    %31 = arith.mulf %6, %29 : vector<1x128xf32>
    %32 = arith.subf %30, %31 : vector<1x128xf32>
    %33 = vector.broadcast %29 : vector<1x128xf32> to vector<32x128xf32>
    %34 = arith.mulf %2, %33 : vector<32x128xf32>
    %35 = vector.broadcast %32 : vector<1x128xf32> to vector<32x128xf32>
    %36 = arith.addf %34, %35 : vector<32x128xf32>
    %cst_15 = arith.constant 0.000000e+00 : f32
    %37 = vector.broadcast %cst_15 : f32 to vector<32x128xf32>
    %38 = arith.cmpf ogt, %36, %37 : vector<32x128xf32>
    %cst_16 = arith.constant 2.000000e-01 : f32
    %39 = vector.broadcast %cst_16 : f32 to vector<32x128xf32>
    %40 = arith.mulf %39, %36 : vector<32x128xf32>
    %41 = arith.select %38, %36, %40 : vector<32x128xi1>, vector<32x128xf32>
    %42 = arith.truncf %41 : vector<32x128xf32> to vector<32x128xbf16>
    %c0_17 = arith.constant 0 : index
    %c0_18 = arith.constant 0 : index
    %43 = vector.load %arg4[%c0_17, %c0_18] : memref<32x128xbf16, #tpu.memory_space<vmem>>, vector<32x128xbf16>
    tpu.vector_store %arg4[%c0_17, %c0_18], %42 {strides = array<i32>} : memref<32x128xbf16, #tpu.memory_space<vmem>>, vector<32x128xbf16>,
    return
  }
}

module attributes {stable_mosaic.version = 11 : i64} {
  func.func @_fused_layer_kernel(%arg0: memref<16x256xbf16, #tpu.memory_space<vmem>>, %arg1: memref<256x128xbf16, #tpu.memory_space<vmem>>, %arg2: memref<1x128xf32, #tpu.memory_space<vmem>>, %arg3: memref<1x128xf32, #tpu.memory_space<vmem>>, %arg4: memref<16x128xbf16, #tpu.memory_space<vmem>>) attributes {dimension_semantics = [], scalar_prefetch = 0 : i64, scratch_operands = 0 : i64, tpu.core_type = #tpu.core_type<tc>} {
    %c0 = arith.constant 0 : index
    %c0_0 = arith.constant 0 : index
    %0 = vector.load %arg0[%c0, %c0_0] : memref<16x256xbf16, #tpu.memory_space<vmem>>, vector<16x256xbf16>
    %c0_1 = arith.constant 0 : index
    %c0_2 = arith.constant 0 : index
    %1 = vector.load %arg1[%c0_1, %c0_2] : memref<256x128xbf16, #tpu.memory_space<vmem>>, vector<256x128xbf16>
    %cst = arith.constant dense<0.000000e+00> : vector<16x128xf32>
    %2 = tpu.matmul %0, %1, %cst {dimension_numbers = #tpu.dot_dimension_numbers<[1], [0], [0], [1], [0, 0, 1, 1], [], []>} : vector<16x256xbf16>, vector<256x128xbf16>, vector<16x128xf32> -> vector<16x128xf32>
    %3 = arith.truncf %2 : vector<16x128xf32> to vector<16x128xbf16>
    %c0_3 = arith.constant 0 : index
    %c0_4 = arith.constant 0 : index
    %4 = vector.load %arg4[%c0_3, %c0_4] : memref<16x128xbf16, #tpu.memory_space<vmem>>, vector<16x128xbf16>
    tpu.vector_store %arg4[%c0_3, %c0_4], %3 {strides = array<i32>} : memref<16x128xbf16, #tpu.memory_space<vmem>>, vector<16x128xbf16>,
    return
  }
}

module attributes {stable_mosaic.version = 11 : i64} {
  func.func @_fused_layer_kernel(%arg0: memref<32x512xbf16, #tpu.memory_space<vmem>>, %arg1: memref<512x128xbf16, #tpu.memory_space<vmem>>, %arg2: memref<1x128xf32, #tpu.memory_space<vmem>>, %arg3: memref<1x128xf32, #tpu.memory_space<vmem>>, %arg4: memref<32x128xbf16, #tpu.memory_space<vmem>>) attributes {dimension_semantics = [], scalar_prefetch = 0 : i64, scratch_operands = 0 : i64, tpu.core_type = #tpu.core_type<tc>} {
    %c0 = arith.constant 0 : index
    %c0_0 = arith.constant 0 : index
    %0 = vector.load %arg0[%c0, %c0_0] : memref<32x512xbf16, #tpu.memory_space<vmem>>, vector<32x512xbf16>
    %c0_1 = arith.constant 0 : index
    %c0_2 = arith.constant 0 : index
    %1 = vector.load %arg1[%c0_1, %c0_2] : memref<512x128xbf16, #tpu.memory_space<vmem>>, vector<512x128xbf16>
    %cst = arith.constant dense<0.000000e+00> : vector<32x128xf32>
    %2 = tpu.matmul %0, %1, %cst {dimension_numbers = #tpu.dot_dimension_numbers<[1], [0], [0], [1], [0, 0, 1, 1], [], []>} : vector<32x512xbf16>, vector<512x128xbf16>, vector<32x128xf32> -> vector<32x128xf32>
    %cst_3 = arith.constant dense<0.000000e+00> : vector<128xf32>
    %3 = vector.multi_reduction <add>, %2, %cst_3 [0] : vector<32x128xf32> to vector<128xf32>
    %4 = vector.shape_cast %3 : vector<128xf32> to vector<1x128xf32>
    %cst_4 = arith.constant 3.125000e-02 : f32
    %5 = vector.broadcast %cst_4 : f32 to vector<1x128xf32>
    %6 = arith.mulf %4, %5 : vector<1x128xf32>
    %7 = tpu.iota {dimensions = array<i32: 0>} : vector<32x1xi32>
    %c32_i32 = arith.constant 32 : i32
    %8 = vector.broadcast %c32_i32 : i32 to vector<32x1xi32>
    %9 = arith.cmpi slt, %7, %8 : vector<32x1xi32>
    %cst_5 = arith.constant 0.000000e+00 : f32
    %10 = vector.broadcast %cst_5 : f32 to vector<1x128xf32>
    %11 = vector.broadcast %6 : vector<1x128xf32> to vector<32x128xf32>
    %12 = arith.subf %2, %11 : vector<32x128xf32>
    %cst_6 = arith.constant 0.000000e+00 : f32
    %13 = vector.shape_cast %9 : vector<32x1xi1> to vector<32x1xi1>
    %14 = vector.broadcast %13 : vector<32x1xi1> to vector<32x128xi1>
    %15 = vector.broadcast %cst_6 : f32 to vector<32x128xf32>
    %16 = arith.select %14, %12, %15 : vector<32x128xi1>, vector<32x128xf32>
    %17 = arith.mulf %16, %16 : vector<32x128xf32>
    %cst_7 = arith.constant dense<0.000000e+00> : vector<128xf32>
    %18 = vector.multi_reduction <add>, %17, %cst_7 [0] : vector<32x128xf32> to vector<128xf32>
    %19 = vector.shape_cast %18 : vector<128xf32> to vector<1x128xf32>
    %20 = arith.addf %10, %19 : vector<1x128xf32>
    %cst_8 = arith.constant 3.125000e-02 : f32
    %21 = vector.broadcast %cst_8 : f32 to vector<1x128xf32>
    %22 = arith.mulf %20, %21 : vector<1x128xf32>
    %cst_9 = arith.constant 0.000000e+00 : f32
    %23 = vector.broadcast %cst_9 : f32 to vector<1x128xf32>
    %24 = arith.maximumf %22, %23 : vector<1x128xf32>
    %c0_10 = arith.constant 0 : index
    %c0_11 = arith.constant 0 : index
    %25 = vector.load %arg2[%c0_10, %c0_11] : memref<1x128xf32, #tpu.memory_space<vmem>>, vector<1x128xf32>
    %cst_12 = arith.constant 9.99999974E-6 : f32
    %26 = vector.broadcast %cst_12 : f32 to vector<1x128xf32>
    %27 = arith.addf %24, %26 : vector<1x128xf32>
    %28 = math.rsqrt %27 : vector<1x128xf32>
    %29 = arith.mulf %25, %28 : vector<1x128xf32>
    %c0_13 = arith.constant 0 : index
    %c0_14 = arith.constant 0 : index
    %30 = vector.load %arg3[%c0_13, %c0_14] : memref<1x128xf32, #tpu.memory_space<vmem>>, vector<1x128xf32>
    %31 = arith.mulf %6, %29 : vector<1x128xf32>
    %32 = arith.subf %30, %31 : vector<1x128xf32>
    %33 = vector.broadcast %29 : vector<1x128xf32> to vector<32x128xf32>
    %34 = arith.mulf %2, %33 : vector<32x128xf32>
    %35 = vector.broadcast %32 : vector<1x128xf32> to vector<32x128xf32>
    %36 = arith.addf %34, %35 : vector<32x128xf32>
    %cst_15 = arith.constant 0.000000e+00 : f32
    %37 = vector.broadcast %cst_15 : f32 to vector<32x128xf32>
    %38 = arith.maximumf %36, %37 : vector<32x128xf32>
    %39 = arith.truncf %38 : vector<32x128xf32> to vector<32x128xbf16>
    %c0_16 = arith.constant 0 : index
    %c0_17 = arith.constant 0 : index
    %40 = vector.load %arg4[%c0_16, %c0_17] : memref<32x128xbf16, #tpu.memory_space<vmem>>, vector<32x128xbf16>
    tpu.vector_store %arg4[%c0_16, %c0_17], %39 {strides = array<i32>} : memref<32x128xbf16, #tpu.memory_space<vmem>>, vector<32x128xbf16>,
    return
  }
}

module attributes {stable_mosaic.version = 11 : i64} {
  func.func @_fused_layer_kernel(%arg0: memref<32x256xbf16, #tpu.memory_space<vmem>>, %arg1: memref<256x512xbf16, #tpu.memory_space<vmem>>, %arg2: memref<1x128xf32, #tpu.memory_space<vmem>>, %arg3: memref<1x128xf32, #tpu.memory_space<vmem>>, %arg4: memref<32x512xbf16, #tpu.memory_space<vmem>>) attributes {dimension_semantics = [], scalar_prefetch = 0 : i64, scratch_operands = 0 : i64, tpu.core_type = #tpu.core_type<tc>} {
    %c0 = arith.constant 0 : index
    %c0_0 = arith.constant 0 : index
    %0 = vector.load %arg0[%c0, %c0_0] : memref<32x256xbf16, #tpu.memory_space<vmem>>, vector<32x256xbf16>
    %c0_1 = arith.constant 0 : index
    %c0_2 = arith.constant 0 : index
    %1 = vector.load %arg1[%c0_1, %c0_2] : memref<256x512xbf16, #tpu.memory_space<vmem>>, vector<256x512xbf16>
    %cst = arith.constant dense<0.000000e+00> : vector<32x512xf32>
    %2 = tpu.matmul %0, %1, %cst {dimension_numbers = #tpu.dot_dimension_numbers<[1], [0], [0], [1], [0, 0, 1, 1], [], []>} : vector<32x256xbf16>, vector<256x512xbf16>, vector<32x512xf32> -> vector<32x512xf32>
    %3 = vector.extract_strided_slice %2 {offsets = [0, 0], sizes = [32, 128], strides = [1, 1]} : vector<32x512xf32> to vector<32x128xf32>
    %4 = vector.extract_strided_slice %2 {offsets = [0, 128], sizes = [32, 128], strides = [1, 1]} : vector<32x512xf32> to vector<32x128xf32>
    %5 = vector.extract_strided_slice %2 {offsets = [0, 256], sizes = [32, 128], strides = [1, 1]} : vector<32x512xf32> to vector<32x128xf32>
    %6 = vector.extract_strided_slice %2 {offsets = [0, 384], sizes = [32, 128], strides = [1, 1]} : vector<32x512xf32> to vector<32x128xf32>
    %7 = arith.addf %3, %4 : vector<32x128xf32>
    %8 = arith.addf %7, %5 : vector<32x128xf32>
    %9 = arith.addf %8, %6 : vector<32x128xf32>
    %cst_3 = arith.constant dense<0.000000e+00> : vector<128xf32>
    %10 = vector.multi_reduction <add>, %9, %cst_3 [0] : vector<32x128xf32> to vector<128xf32>
    %11 = vector.shape_cast %10 : vector<128xf32> to vector<1x128xf32>
    %cst_4 = arith.constant 7.812500e-03 : f32
    %12 = vector.broadcast %cst_4 : f32 to vector<1x128xf32>
    %13 = arith.mulf %11, %12 : vector<1x128xf32>
    %14 = tpu.iota {dimensions = array<i32: 0>} : vector<32x1xi32>
    %c32_i32 = arith.constant 32 : i32
    %15 = vector.broadcast %c32_i32 : i32 to vector<32x1xi32>
    %16 = arith.cmpi slt, %14, %15 : vector<32x1xi32>
    %cst_5 = arith.constant 0.000000e+00 : f32
    %17 = vector.broadcast %cst_5 : f32 to vector<1x128xf32>
    %18 = vector.broadcast %13 : vector<1x128xf32> to vector<32x128xf32>
    %19 = arith.subf %3, %18 : vector<32x128xf32>
    %cst_6 = arith.constant 0.000000e+00 : f32
    %20 = vector.shape_cast %16 : vector<32x1xi1> to vector<32x1xi1>
    %21 = vector.broadcast %20 : vector<32x1xi1> to vector<32x128xi1>
    %22 = vector.broadcast %cst_6 : f32 to vector<32x128xf32>
    %23 = arith.select %21, %19, %22 : vector<32x128xi1>, vector<32x128xf32>
    %24 = arith.mulf %23, %23 : vector<32x128xf32>
    %cst_7 = arith.constant dense<0.000000e+00> : vector<128xf32>
    %25 = vector.multi_reduction <add>, %24, %cst_7 [0] : vector<32x128xf32> to vector<128xf32>
    %26 = vector.shape_cast %25 : vector<128xf32> to vector<1x128xf32>
    %27 = arith.addf %17, %26 : vector<1x128xf32>
    %28 = vector.broadcast %13 : vector<1x128xf32> to vector<32x128xf32>
    %29 = arith.subf %4, %28 : vector<32x128xf32>
    %cst_8 = arith.constant 0.000000e+00 : f32
    %30 = vector.shape_cast %16 : vector<32x1xi1> to vector<32x1xi1>
    %31 = vector.broadcast %30 : vector<32x1xi1> to vector<32x128xi1>
    %32 = vector.broadcast %cst_8 : f32 to vector<32x128xf32>
    %33 = arith.select %31, %29, %32 : vector<32x128xi1>, vector<32x128xf32>
    %34 = arith.mulf %33, %33 : vector<32x128xf32>
    %cst_9 = arith.constant dense<0.000000e+00> : vector<128xf32>
    %35 = vector.multi_reduction <add>, %34, %cst_9 [0] : vector<32x128xf32> to vector<128xf32>
    %36 = vector.shape_cast %35 : vector<128xf32> to vector<1x128xf32>
    %37 = arith.addf %27, %36 : vector<1x128xf32>
    %38 = vector.broadcast %13 : vector<1x128xf32> to vector<32x128xf32>
    %39 = arith.subf %5, %38 : vector<32x128xf32>
    %cst_10 = arith.constant 0.000000e+00 : f32
    %40 = vector.shape_cast %16 : vector<32x1xi1> to vector<32x1xi1>
    %41 = vector.broadcast %40 : vector<32x1xi1> to vector<32x128xi1>
    %42 = vector.broadcast %cst_10 : f32 to vector<32x128xf32>
    %43 = arith.select %41, %39, %42 : vector<32x128xi1>, vector<32x128xf32>
    %44 = arith.mulf %43, %43 : vector<32x128xf32>
    %cst_11 = arith.constant dense<0.000000e+00> : vector<128xf32>
    %45 = vector.multi_reduction <add>, %44, %cst_11 [0] : vector<32x128xf32> to vector<128xf32>
    %46 = vector.shape_cast %45 : vector<128xf32> to vector<1x128xf32>
    %47 = arith.addf %37, %46 : vector<1x128xf32>
    %48 = vector.broadcast %13 : vector<1x128xf32> to vector<32x128xf32>
    %49 = arith.subf %6, %48 : vector<32x128xf32>
    %cst_12 = arith.constant 0.000000e+00 : f32
    %50 = vector.shape_cast %16 : vector<32x1xi1> to vector<32x1xi1>
    %51 = vector.broadcast %50 : vector<32x1xi1> to vector<32x128xi1>
    %52 = vector.broadcast %cst_12 : f32 to vector<32x128xf32>
    %53 = arith.select %51, %49, %52 : vector<32x128xi1>, vector<32x128xf32>
    %54 = arith.mulf %53, %53 : vector<32x128xf32>
    %cst_13 = arith.constant dense<0.000000e+00> : vector<128xf32>
    %55 = vector.multi_reduction <add>, %54, %cst_13 [0] : vector<32x128xf32> to vector<128xf32>
    %56 = vector.shape_cast %55 : vector<128xf32> to vector<1x128xf32>
    %57 = arith.addf %47, %56 : vector<1x128xf32>
    %cst_14 = arith.constant 7.812500e-03 : f32
    %58 = vector.broadcast %cst_14 : f32 to vector<1x128xf32>
    %59 = arith.mulf %57, %58 : vector<1x128xf32>
    %cst_15 = arith.constant 0.000000e+00 : f32
    %60 = vector.broadcast %cst_15 : f32 to vector<1x128xf32>
    %61 = arith.maximumf %59, %60 : vector<1x128xf32>
    %c0_16 = arith.constant 0 : index
    %c0_17 = arith.constant 0 : index
    %62 = vector.load %arg2[%c0_16, %c0_17] : memref<1x128xf32, #tpu.memory_space<vmem>>, vector<1x128xf32>
    %cst_18 = arith.constant 9.99999974E-6 : f32
    %63 = vector.broadcast %cst_18 : f32 to vector<1x128xf32>
    %64 = arith.addf %61, %63 : vector<1x128xf32>
    %65 = math.rsqrt %64 : vector<1x128xf32>
    %66 = arith.mulf %62, %65 : vector<1x128xf32>
    %c0_19 = arith.constant 0 : index
    %c0_20 = arith.constant 0 : index
    %67 = vector.load %arg3[%c0_19, %c0_20] : memref<1x128xf32, #tpu.memory_space<vmem>>, vector<1x128xf32>
    %68 = arith.mulf %13, %66 : vector<1x128xf32>
    %69 = arith.subf %67, %68 : vector<1x128xf32>
    %70 = vector.broadcast %66 : vector<1x128xf32> to vector<32x128xf32>
    %71 = arith.mulf %3, %70 : vector<32x128xf32>
    %72 = vector.broadcast %69 : vector<1x128xf32> to vector<32x128xf32>
    %73 = arith.addf %71, %72 : vector<32x128xf32>
    %cst_21 = arith.constant 0.000000e+00 : f32
    %74 = vector.broadcast %cst_21 : f32 to vector<32x128xf32>
    %75 = arith.maximumf %73, %74 : vector<32x128xf32>
    %76 = arith.truncf %75 : vector<32x128xf32> to vector<32x128xbf16>
    %c0_22 = arith.constant 0 : index
    %c0_23 = arith.constant 0 : index
    %77 = vector.load %arg4[%c0_22, %c0_23] : memref<32x512xbf16, #tpu.memory_space<vmem>>, vector<32x128xbf16>
    tpu.vector_store %arg4[%c0_22, %c0_23], %76 {strides = array<i32>} : memref<32x512xbf16, #tpu.memory_space<vmem>>, vector<32x128xbf16>,
    %78 = vector.broadcast %66 : vector<1x128xf32> to vector<32x128xf32>
    %79 = arith.mulf %4, %78 : vector<32x128xf32>
    %80 = vector.broadcast %69 : vector<1x128xf32> to vector<32x128xf32>
    %81 = arith.addf %79, %80 : vector<32x128xf32>
    %cst_24 = arith.constant 0.000000e+00 : f32
    %82 = vector.broadcast %cst_24 : f32 to vector<32x128xf32>
    %83 = arith.maximumf %81, %82 : vector<32x128xf32>
    %84 = arith.truncf %83 : vector<32x128xf32> to vector<32x128xbf16>
    %c0_25 = arith.constant 0 : index
    %c128 = arith.constant 128 : index
    %85 = vector.load %arg4[%c0_25, %c128] : memref<32x512xbf16, #tpu.memory_space<vmem>>, vector<32x128xbf16>
    tpu.vector_store %arg4[%c0_25, %c128], %84 {strides = array<i32>} : memref<32x512xbf16, #tpu.memory_space<vmem>>, vector<32x128xbf16>,
    %86 = vector.broadcast %66 : vector<1x128xf32> to vector<32x128xf32>
    %87 = arith.mulf %5, %86 : vector<32x128xf32>
    %88 = vector.broadcast %69 : vector<1x128xf32> to vector<32x128xf32>
    %89 = arith.addf %87, %88 : vector<32x128xf32>
    %cst_26 = arith.constant 0.000000e+00 : f32
    %90 = vector.broadcast %cst_26 : f32 to vector<32x128xf32>
    %91 = arith.maximumf %89, %90 : vector<32x128xf32>
    %92 = arith.truncf %91 : vector<32x128xf32> to vector<32x128xbf16>
    %c0_27 = arith.constant 0 : index
    %c256 = arith.constant 256 : index
    %93 = vector.load %arg4[%c0_27, %c256] : memref<32x512xbf16, #tpu.memory_space<vmem>>, vector<32x128xbf16>
    tpu.vector_store %arg4[%c0_27, %c256], %92 {strides = array<i32>} : memref<32x512xbf16, #tpu.memory_space<vmem>>, vector<32x128xbf16>,
    %94 = vector.broadcast %66 : vector<1x128xf32> to vector<32x128xf32>
    %95 = arith.mulf %6, %94 : vector<32x128xf32>
    %96 = vector.broadcast %69 : vector<1x128xf32> to vector<32x128xf32>
    %97 = arith.addf %95, %96 : vector<32x128xf32>
    %cst_28 = arith.constant 0.000000e+00 : f32
    %98 = vector.broadcast %cst_28 : f32 to vector<32x128xf32>
    %99 = arith.maximumf %97, %98 : vector<32x128xf32>
    %100 = arith.truncf %99 : vector<32x128xf32> to vector<32x128xbf16>
    %c0_29 = arith.constant 0 : index
    %c384 = arith.constant 384 : index
    %101 = vector.load %arg4[%c0_29, %c384] : memref<32x512xbf16, #tpu.memory_space<vmem>>, vector<32x128xbf16>
    tpu.vector_store %arg4[%c0_29, %c384], %100 {strides = array<i32>} : memref<32x512xbf16, #tpu.memory_space<vmem>>, vector<32x128xbf16>,
    return
  }
}

module attributes {stable_mosaic.version = 11 : i64} {
  func.func @_fused_layer_kernel(%arg0: memref<128x128xbf16, #tpu.memory_space<vmem>>, %arg1: memref<128x512xbf16, #tpu.memory_space<vmem>>, %arg2: memref<1x128xf32, #tpu.memory_space<vmem>>, %arg3: memref<1x128xf32, #tpu.memory_space<vmem>>, %arg4: memref<128x512xbf16, #tpu.memory_space<vmem>>) attributes {dimension_semantics = [], scalar_prefetch = 0 : i64, scratch_operands = 0 : i64, tpu.core_type = #tpu.core_type<tc>} {
    %c0 = arith.constant 0 : index
    %c0_0 = arith.constant 0 : index
    %0 = vector.load %arg0[%c0, %c0_0] : memref<128x128xbf16, #tpu.memory_space<vmem>>, vector<128x128xbf16>
    %c0_1 = arith.constant 0 : index
    %c0_2 = arith.constant 0 : index
    %1 = vector.load %arg1[%c0_1, %c0_2] : memref<128x512xbf16, #tpu.memory_space<vmem>>, vector<128x512xbf16>
    %cst = arith.constant dense<0.000000e+00> : vector<128x512xf32>
    %2 = tpu.matmul %0, %1, %cst {dimension_numbers = #tpu.dot_dimension_numbers<[1], [0], [0], [1], [0, 0, 1, 1], [], []>} : vector<128x128xbf16>, vector<128x512xbf16>, vector<128x512xf32> -> vector<128x512xf32>
    %3 = vector.extract_strided_slice %2 {offsets = [0, 0], sizes = [128, 128], strides = [1, 1]} : vector<128x512xf32> to vector<128x128xf32>
    %4 = vector.extract_strided_slice %2 {offsets = [0, 128], sizes = [128, 128], strides = [1, 1]} : vector<128x512xf32> to vector<128x128xf32>
    %5 = vector.extract_strided_slice %2 {offsets = [0, 256], sizes = [128, 128], strides = [1, 1]} : vector<128x512xf32> to vector<128x128xf32>
    %6 = vector.extract_strided_slice %2 {offsets = [0, 384], sizes = [128, 128], strides = [1, 1]} : vector<128x512xf32> to vector<128x128xf32>
    %7 = math.tanh %3 : vector<128x128xf32>
    %8 = arith.truncf %7 : vector<128x128xf32> to vector<128x128xbf16>
    %c0_3 = arith.constant 0 : index
    %c0_4 = arith.constant 0 : index
    %9 = vector.load %arg4[%c0_3, %c0_4] : memref<128x512xbf16, #tpu.memory_space<vmem>>, vector<128x128xbf16>
    tpu.vector_store %arg4[%c0_3, %c0_4], %8 {strides = array<i32>} : memref<128x512xbf16, #tpu.memory_space<vmem>>, vector<128x128xbf16>,
    %10 = math.tanh %4 : vector<128x128xf32>
    %11 = arith.truncf %10 : vector<128x128xf32> to vector<128x128xbf16>
    %c0_5 = arith.constant 0 : index
    %c128 = arith.constant 128 : index
    %12 = vector.load %arg4[%c0_5, %c128] : memref<128x512xbf16, #tpu.memory_space<vmem>>, vector<128x128xbf16>
    tpu.vector_store %arg4[%c0_5, %c128], %11 {strides = array<i32>} : memref<128x512xbf16, #tpu.memory_space<vmem>>, vector<128x128xbf16>,
    %13 = math.tanh %5 : vector<128x128xf32>
    %14 = arith.truncf %13 : vector<128x128xf32> to vector<128x128xbf16>
    %c0_6 = arith.constant 0 : index
    %c256 = arith.constant 256 : index
    %15 = vector.load %arg4[%c0_6, %c256] : memref<128x512xbf16, #tpu.memory_space<vmem>>, vector<128x128xbf16>
    tpu.vector_store %arg4[%c0_6, %c256], %14 {strides = array<i32>} : memref<128x512xbf16, #tpu.memory_space<vmem>>, vector<128x128xbf16>,
    %16 = math.tanh %6 : vector<128x128xf32>
    %17 = arith.truncf %16 : vector<128x128xf32> to vector<128x128xbf16>
    %c0_7 = arith.constant 0 : index
    %c384 = arith.constant 384 : index
    %18 = vector.load %arg4[%c0_7, %c384] : memref<128x512xbf16, #tpu.memory_space<vmem>>, vector<128x128xbf16>
    tpu.vector_store %arg4[%c0_7, %c384], %17 {strides = array<i32>} : memref<128x512xbf16, #tpu.memory_space<vmem>>, vector<128x128xbf16>,
    return
  }
}

</mosaic_0001>

<bundles_post_ra>
// kernel: _netg_forward.9
= control target key start
LH: loop header
LB: loop body
LE: loop exit
PB: predicated region body
PF: predicated region fallthrough
CT: control target
= control target key end

     0   :  { %s648_s1 = inlined_call_operand.vmem [shape: bf16[128,128], index: 1, kind: input, shape index: {}]   ;;  %s649_s2 = inlined_call_operand.vmem [shape: f32[1,128], index: 2, kind: input, shape index: {}]   ;;  %s650_s3 = inlined_call_operand.vmem [shape: f32[1,128], index: 3, kind: input, shape index: {}]   ;;  %s651_s0 = inlined_call_operand.vmem [shape: bf16[128,128], index: 0, kind: input, shape index: {}]   ;;  %s652_s4 = inlined_call_operand.vmem [shape: bf16[128,128], index: 4, kind: output, shape index: {}]  }
   0x1   :  { %v534_v0 = vld [vmem:[%s648_s1] sm:$0xff]   ;;  %v535_v1 = vld [vmem:[%s648_s1 + $0x8] sm:$0xff]   ;;  %v536_v2 = vld [vmem:[%s648_s1 + $0x10] sm:$0xff]  }
   0x2   :  { %486 = vmatprep.subr.bf16.mxu0 %v534_v0  ;;  %518 = vmatprep.subr.bf16.mxu1 %v534_v0  ;;  %v537_v3 = vld [vmem:[%s648_s1 + $0x18] sm:$0xff]   ;;  %v542_v4 = vld [vmem:[%s651_s0] sm:$0xff]   ;;  %v539_v7 = vld [vmem:[%s648_s1 + $0x28] sm:$0xff]  }
   0x3   :  { %487 = vmatpush3.bf16.msra.mxu0 %v534_v0  ;;  %526 = vmatpush3.bf16.msra.mxu1 %v534_v0  ;;  %v543_v5 = vld [vmem:[%s651_s0 + $0x20] sm:$0xff]   ;;  %v540_v8 = vld [vmem:[%s648_s1 + $0x30] sm:$0xff]   ;;  %v541_v9 = vld [vmem:[%s648_s1 + $0x38] sm:$0xff]  }
   0x4   :  { %488 = vmatprep.subr.bf16.mxu0 %v535_v1  ;;  %519 = vmatprep.subr.bf16.mxu1 %v535_v1  ;;  %v538_v6 = vld [vmem:[%s648_s1 + $0x20] sm:$0xff]   ;;  %v544_v10 = vld [vmem:[%s651_s0 + $0x8] sm:$0xff]   ;;  %v546_v12 = vld [vmem:[%s651_s0 + $0x10] sm:$0xff]  }
   0x5   :  { %502 = vmatprep.mubr.bf16.mxu0 %v542_v4  ;;  %510 = vmatprep.mubr.bf16.mxu1 %v543_v5  ;;  %v545_v11 = vld [vmem:[%s651_s0 + $0x28] sm:$0xff]   ;;  %v547_v13 = vld [vmem:[%s651_s0 + $0x30] sm:$0xff]   ;;  %v548_v14 = vld [vmem:[%s651_s0 + $0x18] sm:$0xff]  }
   0x6   :  { %v549_v15 = vld [vmem:[%s651_s0 + $0x38] sm:$0xff]  }
   0x7   :  { %489 = vmatpush3.bf16.msra.mxu0 %v535_v1  ;;  %527 = vmatpush3.bf16.msra.mxu1 %v535_v1 }
   0x8   :  { %490 = vmatprep.subr.bf16.mxu0 %v536_v2  ;;  %520 = vmatprep.subr.bf16.mxu1 %v536_v2 }
   0xb   :  { %491 = vmatpush3.bf16.msra.mxu0 %v536_v2  ;;  %528 = vmatpush3.bf16.msra.mxu1 %v536_v2 }
   0xc   :  { %492 = vmatprep.subr.bf16.mxu0 %v537_v3  ;;  %521 = vmatprep.subr.bf16.mxu1 %v537_v3 }
   0xf   :  { %493 = vmatpush3.bf16.msra.mxu0 %v537_v3  ;;  %529 = vmatpush3.bf16.msra.mxu1 %v537_v3 }
  0x10   :  { %494 = vmatprep.subr.bf16.mxu0 %v538_v6  ;;  %522 = vmatprep.subr.bf16.mxu1 %v538_v6 }
  0x13   :  { %495 = vmatpush3.bf16.msra.mxu0 %v538_v6  ;;  %530 = vmatpush3.bf16.msra.mxu1 %v538_v6 }
  0x14   :  { %496 = vmatprep.subr.bf16.mxu0 %v539_v7  ;;  %523 = vmatprep.subr.bf16.mxu1 %v539_v7 }
  0x17   :  { %497 = vmatpush3.bf16.msra.mxu0 %v539_v7  ;;  %531 = vmatpush3.bf16.msra.mxu1 %v539_v7 }
  0x18   :  { %498 = vmatprep.subr.bf16.mxu0 %v540_v8  ;;  %524 = vmatprep.subr.bf16.mxu1 %v540_v8 }
  0x1b   :  { %499 = vmatpush3.bf16.msra.mxu0 %v540_v8  ;;  %532 = vmatpush3.bf16.msra.mxu1 %v540_v8 }
  0x1c   :  { %500 = vmatprep.subr.bf16.mxu0 %v541_v9  ;;  %525 = vmatprep.subr.bf16.mxu1 %v541_v9 }
  0x1f   :  { %501 = vmatpush3.bf16.msra.mxu0 %v541_v9  ;;  %533 = vmatpush3.bf16.msra.mxu1 %v541_v9 }
  0x22   :  { %503 = vmatmul.mubr.bf16.vlgmr.msra.gmra.mrb[0].mxu0 %v544_v10  ;;  %511 = vmatmul.mubr.bf16.vlgmr.msra.gmra.mrb[0].mxu1 %v545_v11 }
  0x23   :  { %506 = vmatprep.mubr.bf16.mxu0 %v546_v12  ;;  %514 = vmatprep.mubr.bf16.mxu1 %v547_v13 }
  0x2a   :  { %507 = vmatmul.mubr.bf16.gmra.mrb[4].mxu0 %v548_v14  ;;  %515 = vmatmul.mubr.bf16.gmra.mrb[4].mxu1 %v549_v15 }
  0xf5   :  { %v504_v16 = vpop.f32.mrb[0].mxu0  ;;  %v512_v17 = vpop.f32.mrb[0].mxu1 }
  0xf6   :  { %vm245_vm0 = vcmp.gt.f32.partialorder %v504_v16, 0.0  ;;  %v261_v18 = vmul.f32 0.2, %v504_v16  ;;  %v269_v19 = vmul.f32 0.2, %v512_v17  ;;  %vm253_vm1 = vcmp.gt.f32.partialorder %v512_v17, 0.0 }
  0xf7   :  { %v180_v20 = vpop.f32.mrb[1].mxu0  ;;  %v212_v21 = vpop.f32.mrb[1].mxu1 }
  0xf8   :  { %v259_v22 = vmul.f32 0.2, %v180_v20  ;;  %v505_v23 = vpop.f32.mrb[2].mxu0  ;;  %v513_v24 = vpop.f32.mrb[2].mxu1  ;;  %v277_v25 = vsel %vm245_vm0, %v504_v16, %v261_v18  ;;  %v267_v26 = vmul.f32 0.2, %v212_v21  ;;  %v285_v28 = vsel %vm253_vm1, %v512_v17, %v269_v19 }
  0xf9   :  { %vm246_vm2 = vcmp.gt.f32.partialorder %v505_v23, 0.0  ;;  %v262_v27 = vmul.f32 0.2, %v505_v23  ;;  %vm243_vm3 = vcmp.gt.f32.partialorder %v180_v20, 0.0  ;;  %vm254_vm4 = vcmp.gt.f32.partialorder %v513_v24, 0.0  ;;  %v183_v30 = vpop.f32.mrb[3].mxu0 }
  0xfa   :  { %v270_v29 = vmul.f32 0.2, %v513_v24  ;;  %v215_v31 = vpop.f32.mrb[3].mxu1  ;;  %vm251_vm5 = vcmp.gt.f32.partialorder %v212_v21, 0.0  ;;  %vm244_vm6 = vcmp.gt.f32.partialorder %v183_v30, 0.0  ;;  %v275_v37 = vsel %vm243_vm3, %v180_v20, %v259_v22 }
  0xfb   :  { %v278_v32 = vsel %vm246_vm2, %v505_v23, %v262_v27  ;;  %v260_v33 = vmul.f32 0.2, %v183_v30  ;;  %vm252_vm7 = vcmp.gt.f32.partialorder %v215_v31, 0.0  ;;  %v268_v36 = vmul.f32 0.2, %v215_v31 }
  0xfc   :  { %v431_v34 = vpack.c.bf16 %v278_v32, %v277_v25  ;;  %v286_v35 = vsel %vm254_vm4, %v513_v24, %v270_v29  ;;  %v283_v42 = vsel %vm251_vm5, %v212_v21, %v267_v26 }
  0xfd   :  { %v451_v38 = vpack.c.bf16 %v286_v35, %v285_v28  ;;  %v276_v39 = vsel %vm244_vm6, %v183_v30, %v260_v33  ;;  %v508_v40 = vpop.f32.mrb[4].mxu0  ;;  %v516_v41 = vpop.f32.mrb[4].mxu1  ;;  %v284_v44 = vsel %vm252_vm7, %v215_v31, %v268_v36 }
  0xfe   :  { %463 = vst [vmem:[%s652_s4 + $0x8] sm:$0xff] %v431_v34   ;;  %v426_v43 = vpack.c.bf16 %v276_v39, %v275_v37  ;;  %v265_v45 = vmul.f32 0.2, %v508_v40  ;;  %v196_v46 = vpop.f32.mrb[5].mxu0  ;;  %v228_v47 = vpop.f32.mrb[5].mxu1  ;;  %v446_v48 = vpack.c.bf16 %v284_v44, %v283_v42  ;;  %vm249_vm8 = vcmp.gt.f32.partialorder %v508_v40, 0.0 }
  0xff   :  { %467 = vst [vmem:[%s652_s4 + $0x28] sm:$0xff] %v451_v38   ;;  %v273_v49 = vmul.f32 0.2, %v516_v41  ;;  %v509_v50 = vpop.f32.mrb[6].mxu0  ;;  %v517_v51 = vpop.f32.mrb[6].mxu1  ;;  %vm257_vm9 = vcmp.gt.f32.partialorder %v516_v41, 0.0 }
 0x100   :  { %427 = vst [vmem:[%s652_s4] sm:$0xff] %v426_v43   ;;  %v263_v52 = vmul.f32 0.2, %v196_v46  ;;  %v271_v53 = vmul.f32 0.2, %v228_v47  ;;  %v199_v54 = vpop.f32.mrb[7].mxu0  ;;  %466 = vst [vmem:[%s652_s4 + $0x20] sm:$0xff] %v446_v48   ;;  %v281_v57 = vsel %vm249_vm8, %v508_v40, %v265_v45 }
 0x101   :  { %vm247_vm10 = vcmp.gt.f32.partialorder %v196_v46, 0.0  ;;  %vm250_vm11 = vcmp.gt.f32.partialorder %v509_v50, 0.0  ;;  %v266_v55 = vmul.f32 0.2, %v509_v50  ;;  %vm258_vm12 = vcmp.gt.f32.partialorder %v517_v51, 0.0  ;;  %v231_v56 = vpop.f32.mrb[7].mxu1 }
 0x102   :  { %vm255_vm13 = vcmp.gt.f32.partialorder %v228_v47, 0.0  ;;  %v274_v58 = vmul.f32 0.2, %v517_v51  ;;  %vm248_vm14 = vcmp.gt.f32.partialorder %v199_v54, 0.0  ;;  %v264_v60 = vmul.f32 0.2, %v199_v54 }
 0x103   :  { %v282_v59 = vsel %vm250_vm11, %v509_v50, %v266_v55  ;;  %vm256_vm15 = vcmp.gt.f32.partialorder %v231_v56, 0.0  ;;  %v272_v61 = vmul.f32 0.2, %v231_v56  ;;  %v289_v62 = vsel %vm257_vm9, %v516_v41, %v273_v49 }
 0x104   :  { %v279_v63 = vsel %vm247_vm10, %v196_v46, %v263_v52  ;;  %v441_v0 = vpack.c.bf16 %v282_v59, %v281_v57  ;;  %v290_v1 = vsel %vm258_vm12, %v517_v51, %v274_v58  ;;  %v287_v2 = vsel %vm255_vm13, %v228_v47, %v271_v53 }
 0x105   :  { %v461_v3 = vpack.c.bf16 %v290_v1, %v289_v62  ;;  %v280_v4 = vsel %vm248_vm14, %v199_v54, %v264_v60  ;;  %v288_v5 = vsel %vm256_vm15, %v231_v56, %v272_v61 }
 0x106   :  { %465 = vst [vmem:[%s652_s4 + $0x18] sm:$0xff] %v441_v0   ;;  %v436_v6 = vpack.c.bf16 %v280_v4, %v279_v63  ;;  %v456_v7 = vpack.c.bf16 %v288_v5, %v287_v2 }
 0x107   :  { %469 = vst [vmem:[%s652_s4 + $0x38] sm:$0xff] %v461_v3  }
 0x108   :  { %464 = vst [vmem:[%s652_s4 + $0x10] sm:$0xff] %v436_v6   ;;  %468 = vst [vmem:[%s652_s4 + $0x30] sm:$0xff] %v456_v7  }

// kernel: _netg_forward.10
= control target key start
LH: loop header
LB: loop body
LE: loop exit
PB: predicated region body
PF: predicated region fallthrough
CT: control target
= control target key end

     0   :  { %v206_v44 = vlaneseq  ;;  %s399_s1 = inlined_call_operand.vmem [shape: bf16[128,128], index: 1, kind: input, shape index: {}]   ;;  %s400_s0 = inlined_call_operand.vmem [shape: bf16[32,128], index: 0, kind: input, shape index: {}]   ;;  %s401_s2 = inlined_call_operand.vmem [shape: f32[1,128], index: 2, kind: input, shape index: {}]   ;;  %s402_s3 = inlined_call_operand.vmem [shape: f32[1,128], index: 3, kind: input, shape index: {}]   ;;  %s403_s4 = inlined_call_operand.vmem [shape: bf16[32,128], index: 4, kind: output, shape index: {}]  }
   0x1   :  { %v320_v0 = vld [vmem:[%s399_s1] sm:$0xff]   ;;  %v321_v1 = vld [vmem:[%s399_s1 + $0x8] sm:$0xff]   ;;  %v322_v2 = vld [vmem:[%s399_s1 + $0x10] sm:$0xff]  }
   0x2   :  { %300 = vmatprep.subr.bf16.mxu0 %v320_v0  ;;  %v323_v3 = vld [vmem:[%s399_s1 + $0x18] sm:$0xff]   ;;  %v328_v4 = vld [vmem:[%s400_s0] sm:$0xff]   ;;  %v325_v6 = vld [vmem:[%s399_s1 + $0x28] sm:$0xff]   ;;  %v207_v45 = vshrl.u32 %v206_v44, 7 }
   0x3   :  { %301 = vmatpush3.bf16.msra.mxu0 %v320_v0  ;;  %316 = vmatprep.mubr.bf16.mxu0 %v328_v4  ;;  %v324_v5 = vld [vmem:[%s399_s1 + $0x20] sm:$0xff]   ;;  %v326_v7 = vld [vmem:[%s399_s1 + $0x30] sm:$0xff]   ;;  %v327_v8 = vld [vmem:[%s399_s1 + $0x38] sm:$0xff]  }
   0x4   :  { %302 = vmatprep.subr.bf16.mxu0 %v321_v1  ;;  %v329_v9 = vld [vmem:[%s400_s0 + $0x8] sm:$0xff]   ;;  %v198_v46 = vld [vmem:[%s401_s2] sm:$0x1]  ;;  %v208_v47 = vsub.s32 0, %v207_v45 }
   0x5   :  { %v202_v50 = vld [vmem:[%s402_s3] sm:$0x1] }
   0x7   :  { %303 = vmatpush3.bf16.msra.mxu0 %v321_v1 }
   0x8   :  { %304 = vmatprep.subr.bf16.mxu0 %v322_v2 }
   0xb   :  { %305 = vmatpush3.bf16.msra.mxu0 %v322_v2 }
   0xc   :  { %306 = vmatprep.subr.bf16.mxu0 %v323_v3 }
   0xf   :  { %307 = vmatpush3.bf16.msra.mxu0 %v323_v3 }
  0x10   :  { %308 = vmatprep.subr.bf16.mxu0 %v324_v5 }
  0x13   :  { %309 = vmatpush3.bf16.msra.mxu0 %v324_v5 }
  0x14   :  { %310 = vmatprep.subr.bf16.mxu0 %v325_v6 }
  0x17   :  { %311 = vmatpush3.bf16.msra.mxu0 %v325_v6 }
  0x18   :  { %312 = vmatprep.subr.bf16.mxu0 %v326_v7 }
  0x1b   :  { %313 = vmatpush3.bf16.msra.mxu0 %v326_v7 }
  0x1c   :  { %314 = vmatprep.subr.bf16.mxu0 %v327_v8 }
  0x1f   :  { %315 = vmatpush3.bf16.msra.mxu0 %v327_v8 }
  0x22   :  { %317 = vmatmul.mubr.bf16.vlgmr.msra.gmra.mrb[0].mxu0 %v329_v9 }
  0xf5   :  { %v318_v10 = vpop.f32.mrb[0].mxu0 }
  0xf6   :  { %v132_v11 = vpop.f32.mrb[1].mxu0 }
  0xf7   :  { %v319_v12 = vpop.f32.mrb[2].mxu0 }
  0xf8   :  { %v135_v13 = vpop.f32.mrb[3].mxu0 }
  0xf9   :  { %v147_v14 = vadd.f32 %v135_v13, %v132_v11 }
  0xfb   :  { %v148_v15 = vadd.f32 %v318_v10, %v147_v14 }
  0xfd   :  { %v149_v16 = vadd.f32 %v319_v12, %v148_v15 }
  0xff   :  { %v150_v17 = vrot.slane %v149_v16, 4 }
 0x101   :  { %v151_v18 = vadd.f32 %v150_v17, %v149_v16 }
 0x103   :  { %v152_v19 = vrot.slane %v151_v18, 2 }
 0x105   :  { %v153_v20 = vadd.f32 %v152_v19, %v151_v18 }
 0x107   :  { %v154_v21 = vrot.slane %v153_v20, 1 }
 0x109   :  { %v155_v22 = vadd.f32 %v154_v21, %v153_v20 }
 0x10b   :  { %v156_v23 = vmul.f32 0.03125, %v155_v22 }
 0x10d   :  { %v166_v24 = vsub.f32 %v132_v11, %v156_v23  ;;  %v167_v25 = vsub.f32 %v135_v13, %v156_v23  ;;  %v168_v26 = vsub.f32 %v318_v10, %v156_v23  ;;  %v169_v27 = vsub.f32 %v319_v12, %v156_v23 }
 0x10f   :  { %v182_v28 = vmul.f32 %v166_v24, %v166_v24  ;;  %v183_v29 = vmul.f32 %v167_v25, %v167_v25  ;;  %v184_v30 = vmul.f32 %v168_v26, %v168_v26  ;;  %v185_v32 = vmul.f32 %v169_v27, %v169_v27 }
 0x111   :  { %v186_v31 = vadd.f32 %v183_v29, %v182_v28 }
 0x113   :  { %v187_v33 = vadd.f32 %v186_v31, %v184_v30 }
 0x115   :  { %v188_v34 = vadd.f32 %v187_v33, %v185_v32 }
 0x117   :  { %v189_v35 = vrot.slane %v188_v34, 4 }
 0x119   :  { %v190_v36 = vadd.f32 %v189_v35, %v188_v34 }
 0x11b   :  { %v191_v37 = vrot.slane %v190_v36, 2 }
 0x11d   :  { %v192_v38 = vadd.f32 %v191_v37, %v190_v36 }
 0x11f   :  { %v193_v39 = vrot.slane %v192_v38, 1 }
 0x121   :  { %v194_v40 = vadd.f32 %v193_v39, %v192_v38 }
 0x123   :  { %v196_v41 = vmul.f32 0.03125, %v194_v40 }
 0x125   :  { %v197_v42 = vmax.f32 %v196_v41, 0.0 }
 0x127   :  { %v199_v43 = vadd.f32 1e-05, %v197_v42 }
 0x129   :  { %330 = vrsqrt.f32 %v199_v43 }
 0x133   :  { %v331_v48 = vpop.eup %330 }
 0x134   :  { %v201_v49 = vmul.f32 %v331_v48, %v198_v46 }
 0x136   :  { %v203_v51 = vmul.f32 %v201_v49, %v156_v23  ;;  %v209_v52 = vrot.slane %v201_v49, %v208_v47 }
 0x138   :  { %v204_v53 = vsub.f32 %v202_v50, %v203_v51  ;;  %v211_v54 = vmul.f32 %v209_v52, %v132_v11  ;;  %v212_v55 = vmul.f32 %v209_v52, %v135_v13  ;;  %v213_v56 = vmul.f32 %v318_v10, %v209_v52 }
 0x139   :  { %v214_v57 = vmul.f32 %v319_v12, %v209_v52 }
 0x13a   :  { %v219_v58 = vrot.slane %v204_v53, %v208_v47 }
 0x13c   :  { %v221_v59 = vadd.f32 %v219_v58, %v211_v54  ;;  %v222_v60 = vadd.f32 %v219_v58, %v212_v55  ;;  %v223_v61 = vadd.f32 %v219_v58, %v213_v56  ;;  %v224_v62 = vadd.f32 %v219_v58, %v214_v57 }
 0x13e   :  { %vm225_vm0 = vcmp.gt.f32.partialorder %v221_v59, 0.0  ;;  %vm226_vm1 = vcmp.gt.f32.partialorder %v222_v60, 0.0  ;;  %vm227_vm2 = vcmp.gt.f32.partialorder %v223_v61, 0.0  ;;  %vm228_vm3 = vcmp.gt.f32.partialorder %v224_v62, 0.0 }
 0x13f   :  { %v229_v63 = vmul.f32 0.2, %v221_v59  ;;  %v230_v0 = vmul.f32 0.2, %v222_v60  ;;  %v231_v1 = vmul.f32 0.2, %v223_v61 }
 0x140   :  { %v232_v2 = vmul.f32 0.2, %v224_v62 }
 0x141   :  { %v233_v3 = vsel %vm225_vm0, %v221_v59, %v229_v63  ;;  %v234_v4 = vsel %vm226_vm1, %v222_v60, %v230_v0  ;;  %v235_v5 = vsel %vm227_vm2, %v223_v61, %v231_v1 }
 0x142   :  { %v236_v6 = vsel %vm228_vm3, %v224_v62, %v232_v2  ;;  %v282_v7 = vpack.c.bf16 %v234_v4, %v233_v3 }
 0x143   :  { %v287_v8 = vpack.c.bf16 %v236_v6, %v235_v5 }
 0x144   :  { %283 = vst [vmem:[%s403_s4] sm:$0xff] %v282_v7  }
 0x145   :  { %289 = vst [vmem:[%s403_s4 + $0x8] sm:$0xff] %v287_v8  }

// kernel: _netg_forward.11
= control target key start
LH: loop header
LB: loop body
LE: loop exit
PB: predicated region body
PF: predicated region fallthrough
CT: control target
= control target key end

     0   :  { %s363_s1 = inlined_call_operand.vmem [shape: bf16[256,128], index: 1, kind: input, shape index: {}]   ;;  %s364_s2 = inlined_call_operand.vmem [shape: f32[1,128], index: 2, kind: input, shape index: {}]   ;;  %s365_s3 = inlined_call_operand.vmem [shape: f32[1,128], index: 3, kind: input, shape index: {}]   ;;  %s366_s0 = inlined_call_operand.vmem [shape: bf16[16,256], index: 0, kind: input, shape index: {}]   ;;  %s367_s4 = inlined_call_operand.vmem [shape: bf16[16,128], index: 4, kind: output, shape index: {}]  }
   0x1   :  { %v262_v0 = vld [vmem:[%s363_s1 + $0x40] sm:$0xff]   ;;  %v264_v2 = vld [vmem:[%s363_s1 + $0x48] sm:$0xff]   ;;  %v266_v4 = vld [vmem:[%s363_s1 + $0x50] sm:$0xff]  }
   0x2   :  { %v263_v1 = vld [vmem:[%s363_s1] sm:$0xff]   ;;  %240 = vmatprep.subr.bf16.mxu0 %v262_v0  ;;  %v265_v3 = vld [vmem:[%s363_s1 + $0x8] sm:$0xff]   ;;  %v267_v5 = vld [vmem:[%s363_s1 + $0x10] sm:$0xff]  }
   0x3   :  { %241 = vmatpush3.bf16.msra.mxu0 %v263_v1  ;;  %v268_v6 = vld [vmem:[%s363_s1 + $0x58] sm:$0xff]   ;;  %v270_v8 = vld [vmem:[%s363_s1 + $0x60] sm:$0xff]   ;;  %v272_v10 = vld [vmem:[%s363_s1 + $0x68] sm:$0xff]  }
   0x4   :  { %242 = vmatprep.subr.bf16.mxu0 %v264_v2  ;;  %v269_v7 = vld [vmem:[%s363_s1 + $0x18] sm:$0xff]   ;;  %v271_v9 = vld [vmem:[%s363_s1 + $0x20] sm:$0xff]   ;;  %v273_v12 = vld [vmem:[%s363_s1 + $0x28] sm:$0xff]  }
   0x5   :  { %v280_v11 = vld [vmem:[%s366_s0 + $0x4] ss:$8 sps:$4 sm:$0xff]   ;;  %v274_v13 = vld [vmem:[%s363_s1 + $0x70] sm:$0xff]   ;;  %v276_v15 = vld [vmem:[%s363_s1 + $0x78] sm:$0xff]  }
   0x6   :  { %190 = vmatprep.mubr.bf16.mxu0 %v280_v11  ;;  %v275_v14 = vld [vmem:[%s363_s1 + $0x30] sm:$0xff]   ;;  %v277_v16 = vld [vmem:[%s363_s1 + $0x38] sm:$0xff]   ;;  %v278_v17 = vld [vmem:[%s366_s0] ss:$8 sps:$4 sm:$0xff]  }
   0x7   :  { %243 = vmatpush3.bf16.msra.mxu0 %v265_v3 }
   0x8   :  { %244 = vmatprep.subr.bf16.mxu0 %v266_v4 }
   0xb   :  { %245 = vmatpush3.bf16.msra.mxu0 %v267_v5 }
   0xc   :  { %246 = vmatprep.subr.bf16.mxu0 %v268_v6 }
   0xf   :  { %247 = vmatpush3.bf16.msra.mxu0 %v269_v7 }
  0x10   :  { %248 = vmatprep.subr.bf16.mxu0 %v270_v8 }
  0x13   :  { %249 = vmatpush3.bf16.msra.mxu0 %v271_v9 }
  0x14   :  { %250 = vmatprep.subr.bf16.mxu0 %v272_v10 }
  0x17   :  { %251 = vmatpush3.bf16.msra.mxu0 %v273_v12 }
  0x18   :  { %252 = vmatprep.subr.bf16.mxu0 %v274_v13 }
  0x1b   :  { %253 = vmatpush3.bf16.msra.mxu0 %v275_v14 }
  0x1c   :  { %254 = vmatprep.subr.bf16.mxu0 %v276_v15 }
  0x1f   :  { %255 = vmatpush3.bf16.msra.mxu0 %v277_v16 }
  0x22   :  { %191 = vmatmul.mubr.bf16.vlgmr.msra.gmra.mrb[0].mxu0 %v278_v17 }
  0xf5   :  { %v256_v18 = vpop.f32.mrb[0].mxu0 }
  0xf6   :  { %v257_v19 = vpop.f32.mrb[1].mxu0 }
  0xf7   :  { %v258_v20 = vadd.f32 %v257_v19, %v256_v18  ;;  %v259_v21 = vpop.f32.mrb[2].mxu0 }
  0xf8   :  { %v260_v22 = vpop.f32.mrb[3].mxu0 }
  0xf9   :  { %v261_v23 = vadd.f32 %v260_v22, %v259_v21 }
  0xfb   :  { %v238_v24 = vpack.c.bf16 %v261_v23, %v258_v20 }
  0xfd   :  { %239 = vst [vmem:[%s367_s4] sm:$0xff] %v238_v24  }

// kernel: _netg_forward.12
= control target key start
LH: loop header
LB: loop body
LE: loop exit
PB: predicated region body
PF: predicated region fallthrough
CT: control target
= control target key end

     0   :  { %s844_s1 = inlined_call_operand.vmem [shape: bf16[512,128], index: 1, kind: input, shape index: {}]   ;;  %s845_s0 = inlined_call_operand.vmem [shape: bf16[32,512], index: 0, kind: input, shape index: {}]   ;;  %s846_s2 = inlined_call_operand.vmem [shape: f32[1,128], index: 2, kind: input, shape index: {}]   ;;  %s847_s3 = inlined_call_operand.vmem [shape: f32[1,128], index: 3, kind: input, shape index: {}]   ;;  %s848_s4 = inlined_call_operand.vmem [shape: bf16[32,128], index: 4, kind: output, shape index: {}]  }
   0x1   :  { %v641_v0 = vld [vmem:[%s844_s1 + $0x40] sm:$0xff]   ;;  %v645_v4 = vld [vmem:[%s844_s1 + $0x48] sm:$0xff]   ;;  %v649_v8 = vld [vmem:[%s844_s1 + $0x50] sm:$0xff]  }
   0x2   :  { %v642_v1 = vld [vmem:[%s844_s1 + $0xc0] sm:$0xff]   ;;  %585 = vmatprep.subr.bf16.mxu0 %v641_v0  ;;  %v646_v5 = vld [vmem:[%s844_s1 + $0xc8] sm:$0xff]   ;;  %v650_v9 = vld [vmem:[%s844_s1 + $0xd0] sm:$0xff]  }
   0x3   :  { %v643_v2 = vld [vmem:[%s844_s1] sm:$0xff]   ;;  %613 = vmatprep.subr.bf16.mxu1 %v642_v1  ;;  %v647_v6 = vld [vmem:[%s844_s1 + $0x8] sm:$0xff]   ;;  %v651_v10 = vld [vmem:[%s844_s1 + $0x10] sm:$0xff]  }
   0x4   :  { %v644_v3 = vld [vmem:[%s844_s1 + $0x80] sm:$0xff]   ;;  %586 = vmatpush3.bf16.msra.mxu0 %v643_v2  ;;  %v648_v7 = vld [vmem:[%s844_s1 + $0x88] sm:$0xff]   ;;  %v652_v11 = vld [vmem:[%s844_s1 + $0x90] sm:$0xff]  }
   0x5   :  { %614 = vmatpush3.bf16.msra.mxu1 %v644_v3  ;;  %587 = vmatprep.subr.bf16.mxu0 %v645_v4  ;;  %v653_v12 = vld [vmem:[%s844_s1 + $0x58] sm:$0xff]   ;;  %v657_v16 = vld [vmem:[%s844_s1 + $0x60] sm:$0xff]   ;;  %v661_v20 = vld [vmem:[%s844_s1 + $0x68] sm:$0xff]  }
   0x6   :  { %615 = vmatprep.subr.bf16.mxu1 %v646_v5  ;;  %v654_v13 = vld [vmem:[%s844_s1 + $0xd8] sm:$0xff]   ;;  %v658_v17 = vld [vmem:[%s844_s1 + $0xe0] sm:$0xff]   ;;  %v662_v21 = vld [vmem:[%s844_s1 + $0xe8] sm:$0xff]  }
   0x7   :  { %v655_v14 = vld [vmem:[%s844_s1 + $0x18] sm:$0xff]   ;;  %v659_v18 = vld [vmem:[%s844_s1 + $0x20] sm:$0xff]   ;;  %v663_v22 = vld [vmem:[%s844_s1 + $0x28] sm:$0xff]  }
   0x8   :  { %588 = vmatpush3.bf16.msra.mxu0 %v647_v6  ;;  %v656_v15 = vld [vmem:[%s844_s1 + $0x98] sm:$0xff]   ;;  %v660_v19 = vld [vmem:[%s844_s1 + $0xa0] sm:$0xff]   ;;  %v664_v23 = vld [vmem:[%s844_s1 + $0xa8] sm:$0xff]  }
   0x9   :  { %616 = vmatpush3.bf16.msra.mxu1 %v648_v7  ;;  %589 = vmatprep.subr.bf16.mxu0 %v649_v8  ;;  %v665_v24 = vld [vmem:[%s844_s1 + $0x70] sm:$0xff]   ;;  %v669_v28 = vld [vmem:[%s844_s1 + $0x78] sm:$0xff]  }
   0xa   :  { %617 = vmatprep.subr.bf16.mxu1 %v650_v9  ;;  %v666_v25 = vld [vmem:[%s844_s1 + $0xf0] sm:$0xff]   ;;  %v670_v29 = vld [vmem:[%s844_s1 + $0xf8] sm:$0xff]  }
   0xb   :  { %v667_v26 = vld [vmem:[%s844_s1 + $0x30] sm:$0xff]   ;;  %v671_v30 = vld [vmem:[%s844_s1 + $0x38] sm:$0xff]  }
   0xc   :  { %590 = vmatpush3.bf16.msra.mxu0 %v651_v10  ;;  %v668_v27 = vld [vmem:[%s844_s1 + $0xb0] sm:$0xff]   ;;  %v672_v31 = vld [vmem:[%s844_s1 + $0xb8] sm:$0xff]  }
   0xd   :  { %618 = vmatpush3.bf16.msra.mxu1 %v652_v11  ;;  %591 = vmatprep.subr.bf16.mxu0 %v653_v12  ;;  %v673_v32 = vld [vmem:[%s845_s0] ss:$16 sps:$4 sm:$0xff]   ;;  %v675_v33 = vld [vmem:[%s845_s0 + $0x4] ss:$16 sps:$4 sm:$0xff]   ;;  %v676_v34 = vld [vmem:[%s845_s0 + $0x8] ss:$16 sps:$4 sm:$0xff]  }
   0xe   :  { %619 = vmatprep.subr.bf16.mxu1 %v654_v13  ;;  %v678_v35 = vld [vmem:[%s845_s0 + $0xc] ss:$16 sps:$4 sm:$0xff]   ;;  %354 = vmatprep.mubr.bf16.mxu0 %v675_v33  ;;  %v679_v36 = vld [vmem:[%s845_s0 + $0x24] ss:$16 sps:$4 sm:$0xff]   ;;  %v683_v38 = vld [vmem:[%s845_s0 + $0x20] ss:$16 sps:$4 sm:$0xff]  }
   0xf   :  { %403 = vmatprep.mubr.bf16.mxu1 %v678_v35  ;;  %v681_v37 = vld [vmem:[%s845_s0 + $0x2c] ss:$16 sps:$4 sm:$0xff]   ;;  %v684_v39 = vld [vmem:[%s845_s0 + $0x28] ss:$16 sps:$4 sm:$0xff]  }
  0x10   :  { %592 = vmatpush3.bf16.msra.mxu0 %v655_v14 }
  0x11   :  { %620 = vmatpush3.bf16.msra.mxu1 %v656_v15  ;;  %593 = vmatprep.subr.bf16.mxu0 %v657_v16 }
  0x12   :  { %621 = vmatprep.subr.bf16.mxu1 %v658_v17 }
  0x14   :  { %594 = vmatpush3.bf16.msra.mxu0 %v659_v18 }
  0x15   :  { %622 = vmatpush3.bf16.msra.mxu1 %v660_v19  ;;  %595 = vmatprep.subr.bf16.mxu0 %v661_v20 }
  0x16   :  { %623 = vmatprep.subr.bf16.mxu1 %v662_v21 }
  0x18   :  { %596 = vmatpush3.bf16.msra.mxu0 %v663_v22 }
  0x19   :  { %624 = vmatpush3.bf16.msra.mxu1 %v664_v23  ;;  %597 = vmatprep.subr.bf16.mxu0 %v665_v24 }
  0x1a   :  { %625 = vmatprep.subr.bf16.mxu1 %v666_v25 }
  0x1c   :  { %598 = vmatpush3.bf16.msra.mxu0 %v667_v26 }
  0x1d   :  { %626 = vmatpush3.bf16.msra.mxu1 %v668_v27  ;;  %599 = vmatprep.subr.bf16.mxu0 %v669_v28 }
  0x1e   :  { %627 = vmatprep.subr.bf16.mxu1 %v670_v29 }
  0x20   :  { %600 = vmatpush3.bf16.msra.mxu0 %v671_v30 }
  0x21   :  { %628 = vmatpush3.bf16.msra.mxu1 %v672_v31 }
  0x23   :  { %355 = vmatmul.mubr.bf16.vlgmr.msra.gmra.mrb[0].mxu0 %v673_v32 }
  0x24   :  { %404 = vmatmul.mubr.bf16.vlgmr.msra.gmra.mrb[0].mxu1 %v676_v34  ;;  %362 = vmatprep.mubr.bf16.mxu0 %v679_v36  ;;  %v479_v34 = vlaneseq  ;;  %v471_v36 = vld [vmem:[%s846_s2] sm:$0x1] }
  0x25   :  { %411 = vmatprep.mubr.bf16.mxu1 %v681_v37 }
  0x26   :  { %v480_v35 = vshrl.u32 %v479_v34, 7 }
  0x28   :  { %v481_v37 = vsub.s32 0, %v480_v35 }
  0x2b   :  { %363 = vmatmul.mubr.bf16.gmra.mrb[4].mxu0 %v683_v38 }
  0x2c   :  { %412 = vmatmul.mubr.bf16.gmra.mrb[4].mxu1 %v684_v39 }
  0xf6   :  { %v601_v40 = vpop.f32.mrb[0].mxu0 }
  0xf7   :  { %v629_v41 = vpop.f32.mrb[0].mxu1  ;;  %v602_v42 = vpop.f32.mrb[1].mxu0 }
  0xf8   :  { %v603_v43 = vadd.f32 %v602_v42, %v601_v40  ;;  %v630_v44 = vpop.f32.mrb[1].mxu1  ;;  %v604_v45 = vpop.f32.mrb[2].mxu0  ;;  %v475_v40 = vld [vmem:[%s847_s3] sm:$0x1] }
  0xf9   :  { %v631_v46 = vadd.f32 %v630_v44, %v629_v41  ;;  %v632_v47 = vpop.f32.mrb[2].mxu1  ;;  %v605_v48 = vpop.f32.mrb[3].mxu0 }
  0xfa   :  { %v606_v49 = vadd.f32 %v605_v48, %v604_v45  ;;  %v633_v50 = vpop.f32.mrb[3].mxu1 }
  0xfb   :  { %v406_v51 = vadd.f32 %v631_v46, %v603_v43  ;;  %v634_v52 = vadd.f32 %v633_v50, %v632_v47 }
  0xfd   :  { %v409_v53 = vadd.f32 %v634_v52, %v606_v49 }
  0xfe   :  { %v607_v54 = vpop.f32.mrb[4].mxu0 }
  0xff   :  { %v635_v55 = vpop.f32.mrb[4].mxu1  ;;  %v608_v56 = vpop.f32.mrb[5].mxu0  ;;  %v420_v1 = vadd.f32 %v409_v53, %v406_v51 }
 0x100   :  { %v609_v57 = vadd.f32 %v608_v56, %v607_v54  ;;  %v636_v58 = vpop.f32.mrb[5].mxu1  ;;  %v610_v59 = vpop.f32.mrb[6].mxu0 }
 0x101   :  { %v637_v60 = vadd.f32 %v636_v58, %v635_v55  ;;  %v638_v61 = vpop.f32.mrb[6].mxu1  ;;  %v611_v62 = vpop.f32.mrb[7].mxu0 }
 0x102   :  { %v612_v63 = vadd.f32 %v611_v62, %v610_v59  ;;  %v639_v0 = vpop.f32.mrb[7].mxu1 }
 0x103   :  { %v414_v2 = vadd.f32 %v637_v60, %v609_v57  ;;  %v640_v3 = vadd.f32 %v639_v0, %v638_v61 }
 0x105   :  { %v421_v4 = vadd.f32 %v420_v1, %v414_v2  ;;  %v417_v5 = vadd.f32 %v640_v3, %v612_v63 }
 0x107   :  { %v422_v6 = vadd.f32 %v421_v4, %v417_v5 }
 0x109   :  { %v423_v7 = vrot.slane %v422_v6, 4 }
 0x10b   :  { %v424_v8 = vadd.f32 %v423_v7, %v422_v6 }
 0x10d   :  { %v425_v9 = vrot.slane %v424_v8, 2 }
 0x10f   :  { %v426_v10 = vadd.f32 %v425_v9, %v424_v8 }
 0x111   :  { %v427_v11 = vrot.slane %v426_v10, 1 }
 0x113   :  { %v428_v12 = vadd.f32 %v427_v11, %v426_v10 }
 0x115   :  { %v429_v13 = vmul.f32 0.03125, %v428_v12 }
 0x117   :  { %v439_v14 = vsub.f32 %v406_v51, %v429_v13  ;;  %v440_v15 = vsub.f32 %v409_v53, %v429_v13  ;;  %v441_v16 = vsub.f32 %v414_v2, %v429_v13  ;;  %v442_v17 = vsub.f32 %v417_v5, %v429_v13 }
 0x119   :  { %v455_v18 = vmul.f32 %v439_v14, %v439_v14  ;;  %v456_v19 = vmul.f32 %v440_v15, %v440_v15  ;;  %v457_v20 = vmul.f32 %v441_v16, %v441_v16  ;;  %v458_v22 = vmul.f32 %v442_v17, %v442_v17 }
 0x11b   :  { %v459_v21 = vadd.f32 %v456_v19, %v455_v18 }
 0x11d   :  { %v460_v23 = vadd.f32 %v459_v21, %v457_v20 }
 0x11f   :  { %v461_v24 = vadd.f32 %v460_v23, %v458_v22 }
 0x121   :  { %v462_v25 = vrot.slane %v461_v24, 4 }
 0x123   :  { %v463_v26 = vadd.f32 %v462_v25, %v461_v24 }
 0x125   :  { %v464_v27 = vrot.slane %v463_v26, 2 }
 0x127   :  { %v465_v28 = vadd.f32 %v464_v27, %v463_v26 }
 0x129   :  { %v466_v29 = vrot.slane %v465_v28, 1 }
 0x12b   :  { %v467_v30 = vadd.f32 %v466_v29, %v465_v28 }
 0x12d   :  { %v469_v31 = vmul.f32 0.03125, %v467_v30 }
 0x12f   :  { %v470_v32 = vmax.f32 %v469_v31, 0.0 }
 0x131   :  { %v472_v33 = vadd.f32 1e-05, %v470_v32 }
 0x133   :  { %685 = vrsqrt.f32 %v472_v33 }
 0x13d   :  { %v686_v38 = vpop.eup %685 }
 0x13e   :  { %v474_v39 = vmul.f32 %v686_v38, %v471_v36 }
 0x140   :  { %v476_v41 = vmul.f32 %v474_v39, %v429_v13  ;;  %v482_v42 = vrot.slane %v474_v39, %v481_v37 }
 0x142   :  { %v477_v43 = vsub.f32 %v475_v40, %v476_v41  ;;  %v486_v44 = vmul.f32 %v482_v42, %v414_v2  ;;  %v487_v45 = vmul.f32 %v482_v42, %v417_v5  ;;  %v484_v46 = vmul.f32 %v482_v42, %v406_v51 }
 0x143   :  { %v485_v47 = vmul.f32 %v482_v42, %v409_v53 }
 0x144   :  { %v492_v48 = vrot.slane %v477_v43, %v481_v37 }
 0x146   :  { %v494_v49 = vadd.f32 %v492_v48, %v484_v46  ;;  %v495_v50 = vadd.f32 %v492_v48, %v485_v47  ;;  %v496_v52 = vadd.f32 %v492_v48, %v486_v44  ;;  %v497_v54 = vadd.f32 %v492_v48, %v487_v45 }
 0x148   :  { %v498_v55 = vmax.f32 %v494_v49, 0.0  ;;  %v499_v56 = vmax.f32 %v495_v50, 0.0  ;;  %v500_v57 = vmax.f32 %v496_v52, 0.0  ;;  %v501_v58 = vmax.f32 %v497_v54, 0.0 }
 0x14a   :  { %v577_v59 = vpack.c.bf16 %v499_v56, %v498_v55  ;;  %v582_v60 = vpack.c.bf16 %v501_v58, %v500_v57 }
 0x14c   :  { %578 = vst [vmem:[%s848_s4] sm:$0xff] %v577_v59   ;;  %584 = vst [vmem:[%s848_s4 + $0x8] sm:$0xff] %v582_v60  }

// kernel: _netg_forward.13
= control target key start
LH: loop header
LB: loop body
LE: loop exit
PB: predicated region body
PF: predicated region fallthrough
CT: control target
= control target key end

     0   :  { %s1397_s1 = inlined_call_operand.vmem [shape: bf16[256,512], index: 1, kind: input, shape index: {}]   ;;  %s1398_s0 = inlined_call_operand.vmem [shape: bf16[32,256], index: 0, kind: input, shape index: {}]   ;;  %s1399_s2 = inlined_call_operand.vmem [shape: f32[1,128], index: 2, kind: input, shape index: {}]   ;;  %s1400_s3 = inlined_call_operand.vmem [shape: f32[1,128], index: 3, kind: input, shape index: {}]   ;;  %s1401_s4 = inlined_call_operand.vmem [shape: bf16[32,512], index: 4, kind: output, shape index: {}]  }
   0x1   :  { %v911_v0 = vld [vmem:[%s1397_s1 + $0x4] ss:$16 sps:$4 sm:$0xff]   ;;  %v913_v1 = vld [vmem:[%s1397_s1 + $0xc] ss:$16 sps:$4 sm:$0xff]   ;;  %v915_v2 = vld [vmem:[%s1397_s1] ss:$16 sps:$4 sm:$0xff]  }
   0x2   :  { %425 = vmatprep.subr.bf16.mxu0 %v911_v0  ;;  %v916_v3 = vld [vmem:[%s1397_s1 + $0x8] ss:$16 sps:$4 sm:$0xff]   ;;  %478 = vmatprep.subr.bf16.mxu1 %v913_v1  ;;  %v917_v4 = vld [vmem:[%s1397_s1 + $0x24] ss:$16 sps:$4 sm:$0xff]   ;;  %v919_v5 = vld [vmem:[%s1397_s1 + $0x2c] ss:$16 sps:$4 sm:$0xff]  }
   0x3   :  { %426 = vmatpush1.bf16.msra.mxu0 %v915_v2  ;;  %479 = vmatpush1.bf16.msra.mxu1 %v916_v3  ;;  %v921_v6 = vld [vmem:[%s1397_s1 + $0x20] ss:$16 sps:$4 sm:$0xff]   ;;  %v922_v7 = vld [vmem:[%s1397_s1 + $0x28] ss:$16 sps:$4 sm:$0xff]   ;;  %v923_v8 = vld [vmem:[%s1397_s1 + $0x44] ss:$16 sps:$4 sm:$0xff]  }
   0x4   :  { %427 = vmatprep.subr.bf16.mxu0 %v917_v4  ;;  %480 = vmatprep.subr.bf16.mxu1 %v919_v5  ;;  %v925_v9 = vld [vmem:[%s1397_s1 + $0x4c] ss:$16 sps:$4 sm:$0xff]   ;;  %v927_v10 = vld [vmem:[%s1397_s1 + $0x40] ss:$16 sps:$4 sm:$0xff]   ;;  %v928_v11 = vld [vmem:[%s1397_s1 + $0x48] ss:$16 sps:$4 sm:$0xff]  }
   0x5   :  { %v929_v12 = vld [vmem:[%s1397_s1 + $0x64] ss:$16 sps:$4 sm:$0xff]   ;;  %v931_v13 = vld [vmem:[%s1397_s1 + $0x6c] ss:$16 sps:$4 sm:$0xff]   ;;  %v933_v14 = vld [vmem:[%s1397_s1 + $0x60] ss:$16 sps:$4 sm:$0xff]  }
   0x6   :  { %v934_v15 = vld [vmem:[%s1397_s1 + $0x68] ss:$16 sps:$4 sm:$0xff]   ;;  %v935_v16 = vld [vmem:[%s1397_s1 + $0x84] ss:$16 sps:$4 sm:$0xff]   ;;  %v937_v17 = vld [vmem:[%s1397_s1 + $0x8c] ss:$16 sps:$4 sm:$0xff]  }
   0x7   :  { %428 = vmatpush1.bf16.msra.mxu0 %v921_v6  ;;  %481 = vmatpush1.bf16.msra.mxu1 %v922_v7  ;;  %v939_v18 = vld [vmem:[%s1397_s1 + $0x80] ss:$16 sps:$4 sm:$0xff]   ;;  %v940_v19 = vld [vmem:[%s1397_s1 + $0x88] ss:$16 sps:$4 sm:$0xff]   ;;  %v941_v20 = vld [vmem:[%s1397_s1 + $0xa4] ss:$16 sps:$4 sm:$0xff]  }
   0x8   :  { %429 = vmatprep.subr.bf16.mxu0 %v923_v8  ;;  %482 = vmatprep.subr.bf16.mxu1 %v925_v9  ;;  %v943_v21 = vld [vmem:[%s1397_s1 + $0xac] ss:$16 sps:$4 sm:$0xff]   ;;  %v945_v22 = vld [vmem:[%s1397_s1 + $0xa0] ss:$16 sps:$4 sm:$0xff]   ;;  %v946_v23 = vld [vmem:[%s1397_s1 + $0xa8] ss:$16 sps:$4 sm:$0xff]  }
   0x9   :  { %v947_v24 = vld [vmem:[%s1397_s1 + $0xc4] ss:$16 sps:$4 sm:$0xff]   ;;  %v949_v25 = vld [vmem:[%s1397_s1 + $0xcc] ss:$16 sps:$4 sm:$0xff]   ;;  %v951_v26 = vld [vmem:[%s1397_s1 + $0xc0] ss:$16 sps:$4 sm:$0xff]  }
   0xa   :  { %v952_v27 = vld [vmem:[%s1397_s1 + $0xc8] ss:$16 sps:$4 sm:$0xff]   ;;  %v953_v28 = vld [vmem:[%s1397_s1 + $0xe4] ss:$16 sps:$4 sm:$0xff]   ;;  %v955_v29 = vld [vmem:[%s1397_s1 + $0xec] ss:$16 sps:$4 sm:$0xff]  }
   0xb   :  { %430 = vmatpush1.bf16.msra.mxu0 %v927_v10  ;;  %483 = vmatpush1.bf16.msra.mxu1 %v928_v11  ;;  %v957_v30 = vld [vmem:[%s1397_s1 + $0xe0] ss:$16 sps:$4 sm:$0xff]   ;;  %v958_v31 = vld [vmem:[%s1397_s1 + $0xe8] ss:$16 sps:$4 sm:$0xff]   ;;  %v959_v32 = vld [vmem:[%s1397_s1 + $0x104] ss:$16 sps:$4 sm:$0xff]  }
   0xc   :  { %431 = vmatprep.subr.bf16.mxu0 %v929_v12  ;;  %484 = vmatprep.subr.bf16.mxu1 %v931_v13  ;;  %v961_v33 = vld [vmem:[%s1397_s1 + $0x10c] ss:$16 sps:$4 sm:$0xff]   ;;  %v963_v34 = vld [vmem:[%s1397_s1 + $0x100] ss:$16 sps:$4 sm:$0xff]   ;;  %v964_v35 = vld [vmem:[%s1397_s1 + $0x108] ss:$16 sps:$4 sm:$0xff]  }
   0xd   :  { %v965_v36 = vld [vmem:[%s1397_s1 + $0x124] ss:$16 sps:$4 sm:$0xff]   ;;  %v967_v37 = vld [vmem:[%s1397_s1 + $0x12c] ss:$16 sps:$4 sm:$0xff]   ;;  %v969_v38 = vld [vmem:[%s1397_s1 + $0x120] ss:$16 sps:$4 sm:$0xff]  }
   0xe   :  { %v970_v39 = vld [vmem:[%s1397_s1 + $0x128] ss:$16 sps:$4 sm:$0xff]   ;;  %v971_v40 = vld [vmem:[%s1397_s1 + $0x144] ss:$16 sps:$4 sm:$0xff]   ;;  %v973_v41 = vld [vmem:[%s1397_s1 + $0x14c] ss:$16 sps:$4 sm:$0xff]  }
   0xf   :  { %432 = vmatpush1.bf16.msra.mxu0 %v933_v14  ;;  %485 = vmatpush1.bf16.msra.mxu1 %v934_v15  ;;  %v975_v42 = vld [vmem:[%s1397_s1 + $0x140] ss:$16 sps:$4 sm:$0xff]   ;;  %v976_v43 = vld [vmem:[%s1397_s1 + $0x148] ss:$16 sps:$4 sm:$0xff]   ;;  %v977_v44 = vld [vmem:[%s1397_s1 + $0x164] ss:$16 sps:$4 sm:$0xff]  }
  0x10   :  { %433 = vmatprep.subr.bf16.mxu0 %v935_v16  ;;  %486 = vmatprep.subr.bf16.mxu1 %v937_v17  ;;  %v979_v45 = vld [vmem:[%s1397_s1 + $0x16c] ss:$16 sps:$4 sm:$0xff]   ;;  %v981_v46 = vld [vmem:[%s1397_s1 + $0x160] ss:$16 sps:$4 sm:$0xff]   ;;  %v982_v48 = vld [vmem:[%s1397_s1 + $0x168] ss:$16 sps:$4 sm:$0xff]  }
  0x11   :  { %v1009_v47 = vld [vmem:[%s1398_s0 + $0x4] ss:$8 sps:$4 sm:$0xff]   ;;  %v987_v51 = vld [vmem:[%s1397_s1 + $0x180] ss:$16 sps:$4 sm:$0xff]   ;;  %v988_v52 = vld [vmem:[%s1397_s1 + $0x188] ss:$16 sps:$4 sm:$0xff]  }
  0x12   :  { %v983_v49 = vld [vmem:[%s1397_s1 + $0x184] ss:$16 sps:$4 sm:$0xff]   ;;  %v985_v50 = vld [vmem:[%s1397_s1 + $0x18c] ss:$16 sps:$4 sm:$0xff]   ;;  %457 = vmatprep.mubr.bf16.mxu0 %v1009_v47  ;;  %510 = vmatprep.mubr.bf16.mxu1 %v1009_v47  ;;  %v993_v55 = vld [vmem:[%s1397_s1 + $0x1a0] ss:$16 sps:$4 sm:$0xff]  }
  0x13   :  { %434 = vmatpush1.bf16.msra.mxu0 %v939_v18  ;;  %487 = vmatpush1.bf16.msra.mxu1 %v940_v19  ;;  %v989_v53 = vld [vmem:[%s1397_s1 + $0x1a4] ss:$16 sps:$4 sm:$0xff]   ;;  %v991_v54 = vld [vmem:[%s1397_s1 + $0x1ac] ss:$16 sps:$4 sm:$0xff]   ;;  %v994_v56 = vld [vmem:[%s1397_s1 + $0x1a8] ss:$16 sps:$4 sm:$0xff]  }
  0x14   :  { %435 = vmatprep.subr.bf16.mxu0 %v941_v20  ;;  %488 = vmatprep.subr.bf16.mxu1 %v943_v21  ;;  %v995_v57 = vld [vmem:[%s1397_s1 + $0x1c4] ss:$16 sps:$4 sm:$0xff]   ;;  %v997_v58 = vld [vmem:[%s1397_s1 + $0x1cc] ss:$16 sps:$4 sm:$0xff]   ;;  %v999_v59 = vld [vmem:[%s1397_s1 + $0x1c0] ss:$16 sps:$4 sm:$0xff]  }
  0x15   :  { %v1000_v60 = vld [vmem:[%s1397_s1 + $0x1c8] ss:$16 sps:$4 sm:$0xff]   ;;  %v1001_v61 = vld [vmem:[%s1397_s1 + $0x1e4] ss:$16 sps:$4 sm:$0xff]   ;;  %v1003_v62 = vld [vmem:[%s1397_s1 + $0x1ec] ss:$16 sps:$4 sm:$0xff]  }
  0x16   :  { %v1005_v63 = vld [vmem:[%s1397_s1 + $0x1e0] ss:$16 sps:$4 sm:$0xff]   ;;  %v1006_v0 = vld [vmem:[%s1397_s1 + $0x1e8] ss:$16 sps:$4 sm:$0xff]   ;;  %v1010_v2 = vld [vmem:[%s1398_s0 + $0x14] ss:$8 sps:$4 sm:$0xff]  }
  0x17   :  { %436 = vmatpush1.bf16.msra.mxu0 %v945_v22  ;;  %489 = vmatpush1.bf16.msra.mxu1 %v946_v23  ;;  %v1007_v1 = vld [vmem:[%s1398_s0] ss:$8 sps:$4 sm:$0xff]   ;;  %v1012_v3 = vld [vmem:[%s1398_s0 + $0x10] ss:$8 sps:$4 sm:$0xff]  }
  0x18   :  { %437 = vmatprep.subr.bf16.mxu0 %v947_v24  ;;  %490 = vmatprep.subr.bf16.mxu1 %v949_v25 }
  0x1b   :  { %438 = vmatpush1.bf16.msra.mxu0 %v951_v26  ;;  %491 = vmatpush1.bf16.msra.mxu1 %v952_v27 }
  0x1c   :  { %439 = vmatprep.subr.bf16.mxu0 %v953_v28  ;;  %492 = vmatprep.subr.bf16.mxu1 %v955_v29 }
  0x1f   :  { %440 = vmatpush1.bf16.msra.mxu0 %v957_v30  ;;  %493 = vmatpush1.bf16.msra.mxu1 %v958_v31 }
  0x20   :  { %441 = vmatprep.subr.bf16.mxu0 %v959_v32  ;;  %494 = vmatprep.subr.bf16.mxu1 %v961_v33 }
  0x23   :  { %442 = vmatpush1.bf16.msra.mxu0 %v963_v34  ;;  %495 = vmatpush1.bf16.msra.mxu1 %v964_v35 }
  0x24   :  { %443 = vmatprep.subr.bf16.mxu0 %v965_v36  ;;  %496 = vmatprep.subr.bf16.mxu1 %v967_v37 }
  0x27   :  { %444 = vmatpush1.bf16.msra.mxu0 %v969_v38  ;;  %497 = vmatpush1.bf16.msra.mxu1 %v970_v39 }
  0x28   :  { %445 = vmatprep.subr.bf16.mxu0 %v971_v40  ;;  %498 = vmatprep.subr.bf16.mxu1 %v973_v41 }
  0x2b   :  { %446 = vmatpush1.bf16.msra.mxu0 %v975_v42  ;;  %499 = vmatpush1.bf16.msra.mxu1 %v976_v43 }
  0x2c   :  { %447 = vmatprep.subr.bf16.mxu0 %v977_v44  ;;  %500 = vmatprep.subr.bf16.mxu1 %v979_v45 }
  0x2f   :  { %448 = vmatpush1.bf16.msra.mxu0 %v981_v46  ;;  %501 = vmatpush1.bf16.msra.mxu1 %v982_v48 }
  0x30   :  { %449 = vmatprep.subr.bf16.mxu0 %v983_v49  ;;  %502 = vmatprep.subr.bf16.mxu1 %v985_v50 }
  0x33   :  { %450 = vmatpush1.bf16.msra.mxu0 %v987_v51  ;;  %503 = vmatpush1.bf16.msra.mxu1 %v988_v52 }
  0x34   :  { %451 = vmatprep.subr.bf16.mxu0 %v989_v53  ;;  %504 = vmatprep.subr.bf16.mxu1 %v991_v54 }
  0x37   :  { %452 = vmatpush1.bf16.msra.mxu0 %v993_v55  ;;  %505 = vmatpush1.bf16.msra.mxu1 %v994_v56 }
  0x38   :  { %453 = vmatprep.subr.bf16.mxu0 %v995_v57  ;;  %506 = vmatprep.subr.bf16.mxu1 %v997_v58 }
  0x3b   :  { %454 = vmatpush1.bf16.msra.mxu0 %v999_v59  ;;  %507 = vmatpush1.bf16.msra.mxu1 %v1000_v60 }
  0x3c   :  { %455 = vmatprep.subr.bf16.mxu0 %v1001_v61  ;;  %508 = vmatprep.subr.bf16.mxu1 %v1003_v62 }
  0x3f   :  { %456 = vmatpush1.bf16.msra.mxu0 %v1005_v63  ;;  %509 = vmatpush1.bf16.msra.mxu1 %v1006_v0 }
  0x42   :  { %458 = vmatmul.mubr.bf16.vlgmr.msra.gmra.mrb[0].mxu0 %v1007_v1  ;;  %511 = vmatmul.mubr.bf16.vlgmr.msra.gmra.mrb[0].mxu1 %v1007_v1 }
  0x43   :  { %467 = vmatprep.mubr.bf16.mxu0 %v1010_v2  ;;  %520 = vmatprep.mubr.bf16.mxu1 %v1010_v2 }
  0x4a   :  { %468 = vmatmul.mubr.bf16.gmra.mrb[4].mxu0 %v1012_v3  ;;  %521 = vmatmul.mubr.bf16.gmra.mrb[4].mxu1 %v1012_v3 }
 0x115   :  { %v1244_v4 = vpop.f32.mrb[0].mxu0  ;;  %v1246_v5 = vpop.f32.mrb[0].mxu1 }
 0x116   :  { %v1248_v6 = vpop.f32.mrb[1].mxu0  ;;  %v1250_v7 = vpop.f32.mrb[1].mxu1 }
 0x117   :  { %v531_v8 = vadd.f32 %v1248_v6, %v1244_v4  ;;  %v1254_v9 = vpop.f32.mrb[2].mxu0  ;;  %v1256_v10 = vpop.f32.mrb[2].mxu1 }
 0x118   :  { %v1258_v11 = vpop.f32.mrb[3].mxu0  ;;  %v1260_v12 = vpop.f32.mrb[3].mxu1 }
 0x119   :  { %v535_v13 = vadd.f32 %v531_v8, %v1246_v5  ;;  %v532_v14 = vadd.f32 %v1258_v11, %v1254_v9 }
 0x11b   :  { %v539_v15 = vadd.f32 %v535_v13, %v1250_v7  ;;  %v536_v16 = vadd.f32 %v532_v14, %v1256_v10 }
 0x11d   :  { %v540_v17 = vadd.f32 %v536_v16, %v1260_v12  ;;  %v1268_v18 = vpop.f32.mrb[4].mxu0  ;;  %v1270_v19 = vpop.f32.mrb[4].mxu1 }
 0x11e   :  { %v1272_v20 = vpop.f32.mrb[5].mxu0  ;;  %v1274_v21 = vpop.f32.mrb[5].mxu1 }
 0x11f   :  { %v543_v22 = vadd.f32 %v540_v17, %v539_v15  ;;  %v533_v23 = vadd.f32 %v1272_v20, %v1268_v18  ;;  %v1278_v24 = vpop.f32.mrb[6].mxu0  ;;  %v1280_v25 = vpop.f32.mrb[6].mxu1 }
 0x120   :  { %v1282_v26 = vpop.f32.mrb[7].mxu0  ;;  %v1284_v27 = vpop.f32.mrb[7].mxu1 }
 0x121   :  { %v537_v28 = vadd.f32 %v533_v23, %v1270_v19  ;;  %v534_v29 = vadd.f32 %v1282_v26, %v1278_v24 }
 0x123   :  { %v541_v30 = vadd.f32 %v537_v28, %v1274_v21  ;;  %v538_v31 = vadd.f32 %v534_v29, %v1280_v25 }
 0x125   :  { %v544_v32 = vadd.f32 %v543_v22, %v541_v30  ;;  %v542_v33 = vadd.f32 %v538_v31, %v1284_v27 }
 0x127   :  { %v545_v34 = vadd.f32 %v544_v32, %v542_v33 }
 0x129   :  { %v546_v35 = vrot.slane %v545_v34, 4 }
 0x12b   :  { %v547_v36 = vadd.f32 %v546_v35, %v545_v34 }
 0x12d   :  { %v548_v37 = vrot.slane %v547_v36, 2 }
 0x12f   :  { %v549_v38 = vadd.f32 %v548_v37, %v547_v36 }
 0x131   :  { %v550_v39 = vrot.slane %v549_v38, 1 }
 0x133   :  { %v551_v40 = vadd.f32 %v550_v39, %v549_v38 }
 0x135   :  { %v1292_v41 = vmul.f32 0.0078125, %v551_v40 }
 0x137   :  { %v562_v42 = vsub.f32 %v1244_v4, %v1292_v41  ;;  %v563_v43 = vsub.f32 %v1254_v9, %v1292_v41  ;;  %v564_v44 = vsub.f32 %v1268_v18, %v1292_v41  ;;  %v565_v45 = vsub.f32 %v1278_v24, %v1292_v41 }
 0x138   :  { %v592_v46 = vsub.f32 %v1248_v6, %v1292_v41  ;;  %v593_v47 = vsub.f32 %v1258_v11, %v1292_v41  ;;  %v594_v48 = vsub.f32 %v1272_v20, %v1292_v41  ;;  %v595_v49 = vsub.f32 %v1282_v26, %v1292_v41 }
 0x139   :  { %v578_v50 = vmul.f32 %v562_v42, %v562_v42  ;;  %v579_v51 = vmul.f32 %v563_v43, %v563_v43  ;;  %v580_v52 = vmul.f32 %v564_v44, %v564_v44  ;;  %v581_v53 = vmul.f32 %v565_v45, %v565_v45 }
 0x13a   :  { %v600_v54 = vmul.f32 %v592_v46, %v592_v46  ;;  %v601_v55 = vmul.f32 %v593_v47, %v593_v47  ;;  %v602_v56 = vmul.f32 %v594_v48, %v594_v48  ;;  %v614_v58 = vsub.f32 %v1246_v5, %v1292_v41 }
 0x13b   :  { %v582_v57 = vadd.f32 %v579_v51, %v578_v50  ;;  %v615_v59 = vsub.f32 %v1256_v10, %v1292_v41  ;;  %v616_v60 = vsub.f32 %v1270_v19, %v1292_v41  ;;  %v617_v62 = vsub.f32 %v1280_v25, %v1292_v41 }
 0x13c   :  { %v604_v61 = vadd.f32 %v601_v55, %v600_v54  ;;  %v636_v63 = vsub.f32 %v1250_v7, %v1292_v41  ;;  %v637_v0 = vsub.f32 %v1260_v12, %v1292_v41  ;;  %v603_v2 = vmul.f32 %v595_v49, %v595_v49 }
 0x13d   :  { %v583_v1 = vadd.f32 %v582_v57, %v580_v52  ;;  %v622_v3 = vmul.f32 %v614_v58, %v614_v58  ;;  %v623_v8 = vmul.f32 %v615_v59, %v615_v59  ;;  %v624_v14 = vmul.f32 %v616_v60, %v616_v60 }
 0x13e   :  { %v605_v13 = vadd.f32 %v604_v61, %v602_v56  ;;  %v638_v15 = vsub.f32 %v1274_v21, %v1292_v41  ;;  %v639_v16 = vsub.f32 %v1284_v27, %v1292_v41  ;;  %v644_v23 = vmul.f32 %v636_v63, %v636_v63 }
 0x13f   :  { %v584_v17 = vadd.f32 %v583_v1, %v581_v53  ;;  %v626_v22 = vadd.f32 %v623_v8, %v622_v3  ;;  %v645_v28 = vmul.f32 %v637_v0, %v637_v0  ;;  %v625_v30 = vmul.f32 %v617_v62, %v617_v62 }
 0x140   :  { %v606_v29 = vadd.f32 %v605_v13, %v603_v2  ;;  %v646_v33 = vmul.f32 %v638_v15, %v638_v15  ;;  %v647_v38 = vmul.f32 %v639_v16, %v639_v16  ;;  %v668_v13 = vlaneseq  ;;  %v660_v15 = vld [vmem:[%s1399_s2] sm:$0x1] }
 0x141   :  { %v585_v31 = vrot.slane %v584_v17, 4  ;;  %v627_v32 = vadd.f32 %v626_v22, %v624_v14  ;;  %v648_v34 = vadd.f32 %v645_v28, %v644_v23  ;;  %v664_v23 = vld [vmem:[%s1400_s3] sm:$0x1] }
 0x142   :  { %v607_v35 = vrot.slane %v606_v29, 4  ;;  %v669_v14 = vshrl.u32 %v668_v13, 7 }
 0x143   :  { %v586_v36 = vadd.f32 %v585_v31, %v584_v17  ;;  %v628_v37 = vadd.f32 %v627_v32, %v625_v30  ;;  %v649_v39 = vadd.f32 %v648_v34, %v646_v33 }
 0x144   :  { %v608_v40 = vadd.f32 %v607_v35, %v606_v29  ;;  %v670_v16 = vsub.s32 0, %v669_v14 }
 0x145   :  { %v587_v42 = vrot.slane %v586_v36, 2  ;;  %v629_v43 = vrot.slane %v628_v37, 4  ;;  %v650_v44 = vadd.f32 %v649_v39, %v647_v38 }
 0x146   :  { %v609_v45 = vrot.slane %v608_v40, 2 }
 0x147   :  { %v588_v46 = vadd.f32 %v587_v42, %v586_v36  ;;  %v630_v47 = vadd.f32 %v629_v43, %v628_v37  ;;  %v651_v48 = vrot.slane %v650_v44, 4 }
 0x148   :  { %v610_v49 = vadd.f32 %v609_v45, %v608_v40 }
 0x149   :  { %v589_v50 = vrot.slane %v588_v46, 1  ;;  %v631_v51 = vrot.slane %v630_v47, 2  ;;  %v652_v52 = vadd.f32 %v651_v48, %v650_v44 }
 0x14a   :  { %v611_v53 = vrot.slane %v610_v49, 1 }
 0x14b   :  { %v590_v54 = vadd.f32 %v589_v50, %v588_v46  ;;  %v632_v55 = vadd.f32 %v631_v51, %v630_v47  ;;  %v653_v56 = vrot.slane %v652_v52, 2 }
 0x14c   :  { %v612_v57 = vadd.f32 %v611_v53, %v610_v49 }
 0x14d   :  { %v633_v58 = vrot.slane %v632_v55, 1  ;;  %v654_v59 = vadd.f32 %v653_v56, %v652_v52 }
 0x14e   :  { %v613_v60 = vadd.f32 %v612_v57, %v590_v54 }
 0x14f   :  { %v634_v61 = vadd.f32 %v633_v58, %v632_v55  ;;  %v655_v62 = vrot.slane %v654_v59, 1 }
 0x151   :  { %v635_v63 = vadd.f32 %v634_v61, %v613_v60  ;;  %v656_v0 = vadd.f32 %v655_v62, %v654_v59 }
 0x153   :  { %v657_v1 = vadd.f32 %v656_v0, %v635_v63 }
 0x155   :  { %v658_v2 = vmul.f32 0.0078125, %v657_v1 }
 0x157   :  { %v659_v3 = vmax.f32 %v658_v2, 0.0 }
 0x159   :  { %v661_v8 = vadd.f32 1e-05, %v659_v3 }
 0x15b   :  { %1013 = vrsqrt.f32 %v661_v8 }
 0x165   :  { %v1014_v17 = vpop.eup %1013 }
 0x166   :  { %v663_v22 = vmul.f32 %v1014_v17, %v660_v15 }
 0x168   :  { %v665_v28 = vmul.f32 %v663_v22, %v1292_v41  ;;  %v671_v29 = vrot.slane %v663_v22, %v670_v16 }
 0x16a   :  { %v666_v30 = vsub.f32 %v664_v23, %v665_v28  ;;  %v673_v31 = vmul.f32 %v671_v29, %v1244_v4  ;;  %v674_v32 = vmul.f32 %v671_v29, %v1254_v9  ;;  %v675_v33 = vmul.f32 %v671_v29, %v1268_v18 }
 0x16b   :  { %v676_v34 = vmul.f32 %v671_v29, %v1278_v24  ;;  %v711_v35 = vmul.f32 %v671_v29, %v1248_v6  ;;  %v712_v36 = vmul.f32 %v671_v29, %v1258_v11  ;;  %v713_v37 = vmul.f32 %v671_v29, %v1272_v20 }
 0x16c   :  { %v681_v38 = vrot.slane %v666_v30, %v670_v16  ;;  %v714_v39 = vmul.f32 %v671_v29, %v1282_v26  ;;  %v743_v41 = vmul.f32 %v671_v29, %v1246_v5  ;;  %v744_v40 = vmul.f32 %v671_v29, %v1256_v10 }
 0x16d   :  { %v745_v4 = vmul.f32 %v671_v29, %v1270_v19  ;;  %v746_v9 = vmul.f32 %v671_v29, %v1280_v25  ;;  %v775_v18 = vmul.f32 %v671_v29, %v1250_v7  ;;  %v776_v24 = vmul.f32 %v671_v29, %v1260_v12 }
 0x16e   :  { %v683_v6 = vadd.f32 %v681_v38, %v673_v31  ;;  %v684_v42 = vadd.f32 %v681_v38, %v674_v32  ;;  %v685_v11 = vadd.f32 %v681_v38, %v675_v33  ;;  %v686_v43 = vadd.f32 %v681_v38, %v676_v34 }
 0x16f   :  { %v715_v20 = vadd.f32 %v711_v35, %v681_v38  ;;  %v716_v44 = vadd.f32 %v712_v36, %v681_v38  ;;  %v717_v45 = vadd.f32 %v713_v37, %v681_v38  ;;  %v718_v26 = vadd.f32 %v714_v39, %v681_v38 }
 0x170   :  { %v687_v46 = vmax.f32 %v683_v6, 0.0  ;;  %v688_v5 = vmax.f32 %v684_v42, 0.0  ;;  %v689_v47 = vmax.f32 %v685_v11, 0.0  ;;  %v690_v10 = vmax.f32 %v686_v43, 0.0 }
 0x171   :  { %v719_v48 = vmax.f32 %v715_v20, 0.0  ;;  %v720_v19 = vmax.f32 %v716_v44, 0.0  ;;  %v721_v49 = vmax.f32 %v717_v45, 0.0  ;;  %v722_v25 = vmax.f32 %v718_v26, 0.0 }
 0x172   :  { %v895_v50 = vpack.c.bf16 %v687_v46, %v687_v46  ;;  %v896_v7 = vpack.c.bf16 %v688_v5, %v688_v5  ;;  %v897_v51 = vpack.c.bf16 %v689_v47, %v689_v47  ;;  %v898_v12 = vpack.c.bf16 %v690_v10, %v690_v10 }
 0x173   :  { %v899_v52 = vpack.c.bf16 %v719_v48, %v719_v48  ;;  %v900_v53 = vpack.c.bf16 %v720_v19, %v720_v19  ;;  %v901_v54 = vpack.c.bf16 %v721_v49, %v721_v49  ;;  %v902_v55 = vpack.c.bf16 %v722_v25, %v722_v25 }
 0x174   :  { %707 = vst [vmem:[%s1401_s4] sm:$0xf] %v895_v50  ;;  %708 = vst [vmem:[%s1401_s4 + $0x10] sm:$0xf] %v896_v7  ;;  %v747_v56 = vadd.f32 %v743_v41, %v681_v38  ;;  %v748_v57 = vadd.f32 %v744_v40, %v681_v38  ;;  %v749_v58 = vadd.f32 %v745_v4, %v681_v38 }
 0x175   :  { %709 = vst [vmem:[%s1401_s4 + $0x20] sm:$0xf] %v897_v51  ;;  %710 = vst [vmem:[%s1401_s4 + $0x30] sm:$0xf] %v898_v12  ;;  %v750_v59 = vadd.f32 %v746_v9, %v681_v38  ;;  %v777_v60 = vmul.f32 %v671_v29, %v1274_v21  ;;  %v778_v61 = vmul.f32 %v671_v29, %v1284_v27 }
 0x176   :  { %739 = vst [vmem:[%s1401_s4 + $0x4] sm:$0xf] %v899_v52  ;;  %740 = vst [vmem:[%s1401_s4 + $0x14] sm:$0xf] %v900_v53  ;;  %v779_v62 = vadd.f32 %v775_v18, %v681_v38  ;;  %v780_v63 = vadd.f32 %v776_v24, %v681_v38  ;;  %v751_v0 = vmax.f32 %v747_v56, 0.0  ;;  %v752_v1 = vmax.f32 %v748_v57, 0.0 }
 0x177   :  { %741 = vst [vmem:[%s1401_s4 + $0x24] sm:$0xf] %v901_v54  ;;  %742 = vst [vmem:[%s1401_s4 + $0x34] sm:$0xf] %v902_v55  ;;  %v753_v2 = vmax.f32 %v749_v58, 0.0  ;;  %v754_v3 = vmax.f32 %v750_v59, 0.0  ;;  %v781_v8 = vadd.f32 %v777_v60, %v681_v38  ;;  %v782_v13 = vadd.f32 %v778_v61, %v681_v38 }
 0x178   :  { %v783_v14 = vmax.f32 %v779_v62, 0.0  ;;  %v784_v15 = vmax.f32 %v780_v63, 0.0  ;;  %v903_v16 = vpack.c.bf16 %v751_v0, %v751_v0  ;;  %v904_v17 = vpack.c.bf16 %v752_v1, %v752_v1 }
 0x179   :  { %v905_v22 = vpack.c.bf16 %v753_v2, %v753_v2  ;;  %v906_v23 = vpack.c.bf16 %v754_v3, %v754_v3  ;;  %v785_v28 = vmax.f32 %v781_v8, 0.0  ;;  %v786_v30 = vmax.f32 %v782_v13, 0.0 }
 0x17a   :  { %v907_v31 = vpack.c.bf16 %v783_v14, %v783_v14  ;;  %v908_v21 = vpack.c.bf16 %v784_v15, %v784_v15  ;;  %771 = vst [vmem:[%s1401_s4 + $0x8] sm:$0xf] %v903_v16  ;;  %772 = vst [vmem:[%s1401_s4 + $0x18] sm:$0xf] %v904_v17 }
 0x17b   :  { %773 = vst [vmem:[%s1401_s4 + $0x28] sm:$0xf] %v905_v22  ;;  %774 = vst [vmem:[%s1401_s4 + $0x38] sm:$0xf] %v906_v23  ;;  %v909_v27 = vpack.c.bf16 %v785_v28, %v785_v28  ;;  %v910_v29 = vpack.c.bf16 %v786_v30, %v786_v30 }
 0x17c   :  { %803 = vst [vmem:[%s1401_s4 + $0xc] sm:$0xf] %v907_v31  ;;  %804 = vst [vmem:[%s1401_s4 + $0x1c] sm:$0xf] %v908_v21 }
 0x17d   :  { %805 = vst [vmem:[%s1401_s4 + $0x2c] sm:$0xf] %v909_v27  ;;  %806 = vst [vmem:[%s1401_s4 + $0x3c] sm:$0xf] %v910_v29 }

// kernel: _netg_forward.14
= control target key start
LH: loop header
LB: loop body
LE: loop exit
PB: predicated region body
PF: predicated region fallthrough
CT: control target
= control target key end

     0   :  { %v1241_v1 = vmov 0   ;;  %s1595_s1 = inlined_call_operand.vmem [shape: bf16[128,512], index: 1, kind: input, shape index: {}]   ;;  %s1596_s2 = inlined_call_operand.vmem [shape: f32[1,128], index: 2, kind: input, shape index: {}]   ;;  %s1597_s3 = inlined_call_operand.vmem [shape: f32[1,128], index: 3, kind: input, shape index: {}]   ;;  %s1598_s0 = inlined_call_operand.vmem [shape: bf16[128,128], index: 0, kind: input, shape index: {}]   ;;  %s1599_s4 = inlined_call_operand.vmem [shape: bf16[128,512], index: 4, kind: output, shape index: {}]  }
   0x1   :  { %v1057_v0 = vld [vmem:[%s1595_s1 + $0x4] ss:$16 sps:$4 sm:$0xff]   ;;  %306 = vmatprep.mubr.bf16.mxu0 %v1241_v1  ;;  %419 = vmatprep.mubr.bf16.mxu1 %v1241_v1  ;;  %v1059_v2 = vld [vmem:[%s1595_s1 + $0xc] ss:$16 sps:$4 sm:$0xff]   ;;  %v1061_v3 = vld [vmem:[%s1595_s1] ss:$16 sps:$4 sm:$0xff]  }
   0x2   :  { %274 = vmatprep.subr.bf16.mxu0 %v1057_v0  ;;  %v1062_v4 = vld [vmem:[%s1595_s1 + $0x8] ss:$16 sps:$4 sm:$0xff]   ;;  %387 = vmatprep.subr.bf16.mxu1 %v1059_v2  ;;  %v1063_v5 = vld [vmem:[%s1595_s1 + $0x24] ss:$16 sps:$4 sm:$0xff]   ;;  %v1065_v6 = vld [vmem:[%s1595_s1 + $0x2c] ss:$16 sps:$4 sm:$0xff]  }
   0x3   :  { %275 = vmatpush1.bf16.msra.mxu0 %v1061_v3  ;;  %388 = vmatpush1.bf16.msra.mxu1 %v1062_v4  ;;  %v1067_v7 = vld [vmem:[%s1595_s1 + $0x20] ss:$16 sps:$4 sm:$0xff]   ;;  %v1068_v8 = vld [vmem:[%s1595_s1 + $0x28] ss:$16 sps:$4 sm:$0xff]   ;;  %v1069_v9 = vld [vmem:[%s1595_s1 + $0x44] ss:$16 sps:$4 sm:$0xff]  }
   0x4   :  { %276 = vmatprep.subr.bf16.mxu0 %v1063_v5  ;;  %389 = vmatprep.subr.bf16.mxu1 %v1065_v6  ;;  %v1071_v10 = vld [vmem:[%s1595_s1 + $0x4c] ss:$16 sps:$4 sm:$0xff]   ;;  %v1073_v11 = vld [vmem:[%s1595_s1 + $0x40] ss:$16 sps:$4 sm:$0xff]   ;;  %v1074_v12 = vld [vmem:[%s1595_s1 + $0x48] ss:$16 sps:$4 sm:$0xff]  }
   0x5   :  { %v1075_v13 = vld [vmem:[%s1595_s1 + $0x64] ss:$16 sps:$4 sm:$0xff]   ;;  %v1077_v14 = vld [vmem:[%s1595_s1 + $0x6c] ss:$16 sps:$4 sm:$0xff]   ;;  %v1079_v15 = vld [vmem:[%s1595_s1 + $0x60] ss:$16 sps:$4 sm:$0xff]  }
   0x6   :  { %v1080_v16 = vld [vmem:[%s1595_s1 + $0x68] ss:$16 sps:$4 sm:$0xff]   ;;  %v1081_v17 = vld [vmem:[%s1595_s1 + $0x84] ss:$16 sps:$4 sm:$0xff]   ;;  %v1083_v18 = vld [vmem:[%s1595_s1 + $0x8c] ss:$16 sps:$4 sm:$0xff]  }
   0x7   :  { %277 = vmatpush1.bf16.msra.mxu0 %v1067_v7  ;;  %390 = vmatpush1.bf16.msra.mxu1 %v1068_v8  ;;  %v1085_v19 = vld [vmem:[%s1595_s1 + $0x80] ss:$16 sps:$4 sm:$0xff]   ;;  %v1086_v20 = vld [vmem:[%s1595_s1 + $0x88] ss:$16 sps:$4 sm:$0xff]   ;;  %v1087_v21 = vld [vmem:[%s1595_s1 + $0xa4] ss:$16 sps:$4 sm:$0xff]  }
   0x8   :  { %278 = vmatprep.subr.bf16.mxu0 %v1069_v9  ;;  %391 = vmatprep.subr.bf16.mxu1 %v1071_v10  ;;  %v1089_v22 = vld [vmem:[%s1595_s1 + $0xac] ss:$16 sps:$4 sm:$0xff]   ;;  %v1091_v23 = vld [vmem:[%s1595_s1 + $0xa0] ss:$16 sps:$4 sm:$0xff]   ;;  %v1092_v24 = vld [vmem:[%s1595_s1 + $0xa8] ss:$16 sps:$4 sm:$0xff]  }
   0x9   :  { %v1093_v25 = vld [vmem:[%s1595_s1 + $0xc4] ss:$16 sps:$4 sm:$0xff]   ;;  %v1095_v26 = vld [vmem:[%s1595_s1 + $0xcc] ss:$16 sps:$4 sm:$0xff]   ;;  %v1097_v27 = vld [vmem:[%s1595_s1 + $0xc0] ss:$16 sps:$4 sm:$0xff]  }
   0xa   :  { %v1098_v28 = vld [vmem:[%s1595_s1 + $0xc8] ss:$16 sps:$4 sm:$0xff]   ;;  %v1099_v29 = vld [vmem:[%s1595_s1 + $0xe4] ss:$16 sps:$4 sm:$0xff]   ;;  %v1101_v30 = vld [vmem:[%s1595_s1 + $0xec] ss:$16 sps:$4 sm:$0xff]  }
   0xb   :  { %279 = vmatpush1.bf16.msra.mxu0 %v1073_v11  ;;  %392 = vmatpush1.bf16.msra.mxu1 %v1074_v12  ;;  %v1103_v31 = vld [vmem:[%s1595_s1 + $0xe0] ss:$16 sps:$4 sm:$0xff]   ;;  %v1104_v32 = vld [vmem:[%s1595_s1 + $0xe8] ss:$16 sps:$4 sm:$0xff]  }
   0xc   :  { %280 = vmatprep.subr.bf16.mxu0 %v1075_v13  ;;  %393 = vmatprep.subr.bf16.mxu1 %v1077_v14  ;;  %v1105_v33 = vld [vmem:[%s1598_s0] sm:$0xff]   ;;  %v1106_v34 = vld [vmem:[%s1598_s0 + $0x8] sm:$0xff]   ;;  %v1107_v35 = vld [vmem:[%s1598_s0 + $0x10] sm:$0xff]  }
   0xd   :  { %v1108_v36 = vld [vmem:[%s1598_s0 + $0x18] sm:$0xff]   ;;  %v1109_v37 = vld [vmem:[%s1598_s0 + $0x20] sm:$0xff]   ;;  %v1110_v38 = vld [vmem:[%s1598_s0 + $0x28] sm:$0xff]  }
   0xe   :  { %v1111_v39 = vld [vmem:[%s1598_s0 + $0x30] sm:$0xff]   ;;  %v1112_v40 = vld [vmem:[%s1598_s0 + $0x38] sm:$0xff]  }
   0xf   :  { %281 = vmatpush1.bf16.msra.mxu0 %v1079_v15  ;;  %394 = vmatpush1.bf16.msra.mxu1 %v1080_v16 }
  0x10   :  { %282 = vmatprep.subr.bf16.mxu0 %v1081_v17  ;;  %395 = vmatprep.subr.bf16.mxu1 %v1083_v18 }
  0x13   :  { %283 = vmatpush1.bf16.msra.mxu0 %v1085_v19  ;;  %396 = vmatpush1.bf16.msra.mxu1 %v1086_v20 }
  0x14   :  { %284 = vmatprep.subr.bf16.mxu0 %v1087_v21  ;;  %397 = vmatprep.subr.bf16.mxu1 %v1089_v22 }
  0x17   :  { %285 = vmatpush1.bf16.msra.mxu0 %v1091_v23  ;;  %398 = vmatpush1.bf16.msra.mxu1 %v1092_v24 }
  0x18   :  { %286 = vmatprep.subr.bf16.mxu0 %v1093_v25  ;;  %399 = vmatprep.subr.bf16.mxu1 %v1095_v26 }
  0x1b   :  { %287 = vmatpush1.bf16.msra.mxu0 %v1097_v27  ;;  %400 = vmatpush1.bf16.msra.mxu1 %v1098_v28 }
  0x1c   :  { %288 = vmatprep.subr.bf16.mxu0 %v1099_v29  ;;  %401 = vmatprep.subr.bf16.mxu1 %v1101_v30 }
  0x1f   :  { %289 = vmatpush1.bf16.msra.mxu0 %v1103_v31  ;;  %402 = vmatpush1.bf16.msra.mxu1 %v1104_v32 }
  0x22   :  { %307 = vmatmul.mubr.bf16.vlgmr.msra.gmra.mrb[0].mxu0 %v1105_v33  ;;  %420 = vmatmul.mubr.bf16.vlgmr.msra.gmra.mrb[0].mxu1 %v1105_v33 }
  0x23   :  { %316 = vmatprep.mubr.bf16.mxu0 %v1241_v1  ;;  %429 = vmatprep.mubr.bf16.mxu1 %v1241_v1 }
  0x2a   :  { %317 = vmatmul.mubr.bf16.gmra.mrb[4].mxu0 %v1106_v34  ;;  %430 = vmatmul.mubr.bf16.gmra.mrb[4].mxu1 %v1106_v34 }
  0x2b   :  { %326 = vmatprep.mubr.bf16.mxu0 %v1241_v1  ;;  %439 = vmatprep.mubr.bf16.mxu1 %v1241_v1 }
  0x32   :  { %327 = vmatmul.mubr.bf16.gmra.mrb[8].mxu0 %v1107_v35  ;;  %440 = vmatmul.mubr.bf16.gmra.mrb[8].mxu1 %v1107_v35 }
  0x33   :  { %336 = vmatprep.mubr.bf16.mxu0 %v1241_v1  ;;  %449 = vmatprep.mubr.bf16.mxu1 %v1241_v1 }
  0x3a   :  { %337 = vmatmul.mubr.bf16.gmra.mrb[12].mxu0 %v1108_v36  ;;  %450 = vmatmul.mubr.bf16.gmra.mrb[12].mxu1 %v1108_v36 }
  0x3b   :  { %346 = vmatprep.mubr.bf16.mxu0 %v1241_v1  ;;  %459 = vmatprep.mubr.bf16.mxu1 %v1241_v1 }
  0x42   :  { %347 = vmatmul.mubr.bf16.gmra.mrb[16].mxu0 %v1109_v37  ;;  %460 = vmatmul.mubr.bf16.gmra.mrb[16].mxu1 %v1109_v37 }
  0x43   :  { %356 = vmatprep.mubr.bf16.mxu0 %v1241_v1  ;;  %469 = vmatprep.mubr.bf16.mxu1 %v1241_v1 }
  0x4a   :  { %357 = vmatmul.mubr.bf16.gmra.mrb[20].mxu0 %v1110_v38  ;;  %470 = vmatmul.mubr.bf16.gmra.mrb[20].mxu1 %v1110_v38 }
  0x4b   :  { %366 = vmatprep.mubr.bf16.mxu0 %v1241_v1  ;;  %479 = vmatprep.mubr.bf16.mxu1 %v1241_v1 }
  0x52   :  { %367 = vmatmul.mubr.bf16.gmra.mrb[24].mxu0 %v1111_v39  ;;  %480 = vmatmul.mubr.bf16.gmra.mrb[24].mxu1 %v1111_v39 }
  0x53   :  { %376 = vmatprep.mubr.bf16.mxu0 %v1241_v1  ;;  %489 = vmatprep.mubr.bf16.mxu1 %v1241_v1 }
  0x5a   :  { %377 = vmatmul.mubr.bf16.gmra.mrb[28].mxu0 %v1112_v40  ;;  %490 = vmatmul.mubr.bf16.gmra.mrb[28].mxu1 %v1112_v40 }
  0xf5   :  { %v308_v41 = vpop.f32.mrb[0].mxu0  ;;  %v421_v42 = vpop.f32.mrb[0].mxu1 }
  0xf6   :  { %1113 = vtanh.f32 %v308_v41  ;;  %v310_v43 = vpop.f32.mrb[1].mxu0  ;;  %v423_v44 = vpop.f32.mrb[1].mxu1 }
  0xf7   :  { %1115 = vtanh.f32 %v421_v42  ;;  %v312_v45 = vpop.f32.mrb[2].mxu0  ;;  %v425_v46 = vpop.f32.mrb[2].mxu1 }
  0xf8   :  { %1117 = vtanh.f32 %v310_v43  ;;  %v314_v47 = vpop.f32.mrb[3].mxu0  ;;  %v427_v48 = vpop.f32.mrb[3].mxu1 }
  0xf9   :  { %1119 = vtanh.f32 %v423_v44 }
  0xfa   :  { %1121 = vtanh.f32 %v312_v45 }
  0xfb   :  { %1123 = vtanh.f32 %v425_v46 }
  0xfc   :  { %1125 = vtanh.f32 %v314_v47 }
  0xfd   :  { %1127 = vtanh.f32 %v427_v48  ;;  %v318_v49 = vpop.f32.mrb[4].mxu0  ;;  %v431_v50 = vpop.f32.mrb[4].mxu1 }
  0xfe   :  { %1129 = vtanh.f32 %v318_v49  ;;  %v320_v51 = vpop.f32.mrb[5].mxu0  ;;  %v433_v52 = vpop.f32.mrb[5].mxu1 }
  0xff   :  { %1131 = vtanh.f32 %v431_v50  ;;  %v322_v53 = vpop.f32.mrb[6].mxu0  ;;  %v435_v54 = vpop.f32.mrb[6].mxu1 }
 0x100   :  { %v1114_v55 = vpop.eup %1113  ;;  %1133 = vtanh.f32 %v320_v51  ;;  %v324_v56 = vpop.f32.mrb[7].mxu0 }
 0x101   :  { %v437_v57 = vpop.f32.mrb[7].mxu1  ;;  %v1116_v58 = vpop.eup %1115  ;;  %v992_v59 = vpack.c.bf16 %v1114_v55, %v1114_v55  ;;  %1135 = vtanh.f32 %v433_v52 }
 0x102   :  { %v1118_v60 = vpop.eup %1117  ;;  %v1024_v61 = vpack.c.bf16 %v1116_v58, %v1116_v58  ;;  %1137 = vtanh.f32 %v322_v53 }
 0x103   :  { %v1120_v62 = vpop.eup %1119  ;;  %580 = vst [vmem:[%s1599_s4] sm:$0xf] %v992_v59  ;;  %v1008_v63 = vpack.c.bf16 %v1118_v60, %v1118_v60  ;;  %1139 = vtanh.f32 %v435_v54 }
 0x104   :  { %v1122_v0 = vpop.eup %1121  ;;  %772 = vst [vmem:[%s1599_s4 + $0x8] sm:$0xf] %v1024_v61  ;;  %v1040_v1 = vpack.c.bf16 %v1120_v62, %v1120_v62  ;;  %1141 = vtanh.f32 %v324_v56 }
 0x105   :  { %v1124_v2 = vpop.eup %1123  ;;  %676 = vst [vmem:[%s1599_s4 + $0x4] sm:$0xf] %v1008_v63  ;;  %v993_v3 = vpack.c.bf16 %v1122_v0, %v1122_v0  ;;  %1143 = vtanh.f32 %v437_v57  ;;  %v328_v4 = vpop.f32.mrb[8].mxu0 }
 0x106   :  { %v441_v5 = vpop.f32.mrb[8].mxu1  ;;  %v1126_v6 = vpop.eup %1125  ;;  %868 = vst [vmem:[%s1599_s4 + $0xc] sm:$0xf] %v1040_v1  ;;  %v1025_v7 = vpack.c.bf16 %v1124_v2, %v1124_v2  ;;  %1145 = vtanh.f32 %v328_v4 }
 0x107   :  { %v330_v8 = vpop.f32.mrb[9].mxu0  ;;  %v443_v9 = vpop.f32.mrb[9].mxu1  ;;  %581 = vst [vmem:[%s1599_s4 + $0x10] sm:$0xf] %v993_v3  ;;  %v1009_v11 = vpack.c.bf16 %v1126_v6, %v1126_v6  ;;  %1147 = vtanh.f32 %v441_v5 }
 0x108   :  { %v1128_v10 = vpop.eup %1127  ;;  %v332_v12 = vpop.f32.mrb[10].mxu0  ;;  %773 = vst [vmem:[%s1599_s4 + $0x18] sm:$0xf] %v1025_v7  ;;  %1149 = vtanh.f32 %v330_v8 }
 0x109   :  { %v445_v13 = vpop.f32.mrb[10].mxu1  ;;  %v1130_v14 = vpop.eup %1129  ;;  %v1041_v15 = vpack.c.bf16 %v1128_v10, %v1128_v10  ;;  %677 = vst [vmem:[%s1599_s4 + $0x14] sm:$0xf] %v1009_v11  ;;  %1151 = vtanh.f32 %v443_v9 }
 0x10a   :  { %v334_v16 = vpop.f32.mrb[11].mxu0  ;;  %v447_v17 = vpop.f32.mrb[11].mxu1  ;;  %v994_v19 = vpack.c.bf16 %v1130_v14, %v1130_v14  ;;  %1153 = vtanh.f32 %v332_v12 }
 0x10b   :  { %v1132_v18 = vpop.eup %1131  ;;  %869 = vst [vmem:[%s1599_s4 + $0x1c] sm:$0xf] %v1041_v15  ;;  %1155 = vtanh.f32 %v445_v13 }
 0x10c   :  { %v1134_v20 = vpop.eup %1133  ;;  %v1026_v21 = vpack.c.bf16 %v1132_v18, %v1132_v18  ;;  %582 = vst [vmem:[%s1599_s4 + $0x20] sm:$0xf] %v994_v19  ;;  %1157 = vtanh.f32 %v334_v16 }
 0x10d   :  { %v1136_v22 = vpop.eup %1135  ;;  %v1010_v23 = vpack.c.bf16 %v1134_v20, %v1134_v20  ;;  %1159 = vtanh.f32 %v447_v17  ;;  %v338_v28 = vpop.f32.mrb[12].mxu0 }
 0x10e   :  { %v1138_v24 = vpop.eup %1137  ;;  %774 = vst [vmem:[%s1599_s4 + $0x28] sm:$0xf] %v1026_v21  ;;  %v1042_v25 = vpack.c.bf16 %v1136_v22, %v1136_v22  ;;  %v451_v29 = vpop.f32.mrb[12].mxu1  ;;  %1161 = vtanh.f32 %v338_v28 }
 0x10f   :  { %v1140_v26 = vpop.eup %1139  ;;  %678 = vst [vmem:[%s1599_s4 + $0x24] sm:$0xf] %v1010_v23  ;;  %v995_v27 = vpack.c.bf16 %v1138_v24, %v1138_v24  ;;  %v340_v32 = vpop.f32.mrb[13].mxu0  ;;  %1163 = vtanh.f32 %v451_v29 }
 0x110   :  { %v1142_v30 = vpop.eup %1141  ;;  %870 = vst [vmem:[%s1599_s4 + $0x2c] sm:$0xf] %v1042_v25  ;;  %v1027_v31 = vpack.c.bf16 %v1140_v26, %v1140_v26  ;;  %v453_v33 = vpop.f32.mrb[13].mxu1  ;;  %1165 = vtanh.f32 %v340_v32 }
 0x111   :  { %v1144_v34 = vpop.eup %1143  ;;  %583 = vst [vmem:[%s1599_s4 + $0x30] sm:$0xf] %v995_v27  ;;  %v1011_v35 = vpack.c.bf16 %v1142_v30, %v1142_v30  ;;  %v342_v36 = vpop.f32.mrb[14].mxu0  ;;  %1167 = vtanh.f32 %v453_v33 }
 0x112   :  { %v455_v37 = vpop.f32.mrb[14].mxu1  ;;  %v1146_v38 = vpop.eup %1145  ;;  %775 = vst [vmem:[%s1599_s4 + $0x38] sm:$0xf] %v1027_v31  ;;  %v1043_v39 = vpack.c.bf16 %v1144_v34, %v1144_v34  ;;  %1169 = vtanh.f32 %v342_v36 }
 0x113   :  { %v344_v40 = vpop.f32.mrb[15].mxu0  ;;  %v457_v41 = vpop.f32.mrb[15].mxu1  ;;  %679 = vst [vmem:[%s1599_s4 + $0x34] sm:$0xf] %v1011_v35  ;;  %v996_v43 = vpack.c.bf16 %v1146_v38, %v1146_v38  ;;  %1171 = vtanh.f32 %v455_v37 }
 0x114   :  { %v1148_v42 = vpop.eup %1147  ;;  %871 = vst [vmem:[%s1599_s4 + $0x3c] sm:$0xf] %v1043_v39  ;;  %1173 = vtanh.f32 %v344_v40 }
 0x115   :  { %v1150_v44 = vpop.eup %1149  ;;  %v1028_v45 = vpack.c.bf16 %v1148_v42, %v1148_v42  ;;  %584 = vst [vmem:[%s1599_s4 + $0x40] sm:$0xf] %v996_v43  ;;  %1175 = vtanh.f32 %v457_v41  ;;  %v348_v52 = vpop.f32.mrb[16].mxu0 }
 0x116   :  { %v1152_v46 = vpop.eup %1151  ;;  %v1012_v47 = vpack.c.bf16 %v1150_v44, %v1150_v44  ;;  %v461_v53 = vpop.f32.mrb[16].mxu1  ;;  %1177 = vtanh.f32 %v348_v52 }
 0x117   :  { %v1154_v48 = vpop.eup %1153  ;;  %776 = vst [vmem:[%s1599_s4 + $0x48] sm:$0xf] %v1028_v45  ;;  %v1044_v49 = vpack.c.bf16 %v1152_v46, %v1152_v46  ;;  %v350_v56 = vpop.f32.mrb[17].mxu0  ;;  %1179 = vtanh.f32 %v461_v53 }
 0x118   :  { %v1156_v50 = vpop.eup %1155  ;;  %680 = vst [vmem:[%s1599_s4 + $0x44] sm:$0xf] %v1012_v47  ;;  %v997_v51 = vpack.c.bf16 %v1154_v48, %v1154_v48  ;;  %v463_v57 = vpop.f32.mrb[17].mxu1  ;;  %1181 = vtanh.f32 %v350_v56 }
 0x119   :  { %v1158_v54 = vpop.eup %1157  ;;  %872 = vst [vmem:[%s1599_s4 + $0x4c] sm:$0xf] %v1044_v49  ;;  %v1029_v55 = vpack.c.bf16 %v1156_v50, %v1156_v50  ;;  %v352_v60 = vpop.f32.mrb[18].mxu0  ;;  %1183 = vtanh.f32 %v463_v57 }
 0x11a   :  { %v1160_v58 = vpop.eup %1159  ;;  %585 = vst [vmem:[%s1599_s4 + $0x50] sm:$0xf] %v997_v51  ;;  %v1013_v59 = vpack.c.bf16 %v1158_v54, %v1158_v54  ;;  %v465_v61 = vpop.f32.mrb[18].mxu1  ;;  %1185 = vtanh.f32 %v352_v60 }
 0x11b   :  { %v1162_v62 = vpop.eup %1161  ;;  %777 = vst [vmem:[%s1599_s4 + $0x58] sm:$0xf] %v1029_v55  ;;  %v1045_v63 = vpack.c.bf16 %v1160_v58, %v1160_v58  ;;  %v354_v0 = vpop.f32.mrb[19].mxu0  ;;  %1187 = vtanh.f32 %v465_v61 }
 0x11c   :  { %v467_v1 = vpop.f32.mrb[19].mxu1  ;;  %v1164_v2 = vpop.eup %1163  ;;  %681 = vst [vmem:[%s1599_s4 + $0x54] sm:$0xf] %v1013_v59  ;;  %v998_v3 = vpack.c.bf16 %v1162_v62, %v1162_v62  ;;  %1189 = vtanh.f32 %v354_v0 }
 0x11d   :  { %v1166_v4 = vpop.eup %1165  ;;  %873 = vst [vmem:[%s1599_s4 + $0x5c] sm:$0xf] %v1045_v63  ;;  %v1030_v5 = vpack.c.bf16 %v1164_v2, %v1164_v2  ;;  %1191 = vtanh.f32 %v467_v1  ;;  %v358_v12 = vpop.f32.mrb[20].mxu0 }
 0x11e   :  { %v1168_v6 = vpop.eup %1167  ;;  %586 = vst [vmem:[%s1599_s4 + $0x60] sm:$0xf] %v998_v3  ;;  %v1014_v7 = vpack.c.bf16 %v1166_v4, %v1166_v4  ;;  %v471_v13 = vpop.f32.mrb[20].mxu1  ;;  %1193 = vtanh.f32 %v358_v12 }
 0x11f   :  { %v1170_v8 = vpop.eup %1169  ;;  %778 = vst [vmem:[%s1599_s4 + $0x68] sm:$0xf] %v1030_v5  ;;  %v1046_v9 = vpack.c.bf16 %v1168_v6, %v1168_v6  ;;  %v360_v16 = vpop.f32.mrb[21].mxu0  ;;  %1195 = vtanh.f32 %v471_v13 }
 0x120   :  { %v1172_v10 = vpop.eup %1171  ;;  %682 = vst [vmem:[%s1599_s4 + $0x64] sm:$0xf] %v1014_v7  ;;  %v999_v11 = vpack.c.bf16 %v1170_v8, %v1170_v8  ;;  %v473_v17 = vpop.f32.mrb[21].mxu1  ;;  %1197 = vtanh.f32 %v360_v16 }
 0x121   :  { %v1174_v14 = vpop.eup %1173  ;;  %874 = vst [vmem:[%s1599_s4 + $0x6c] sm:$0xf] %v1046_v9  ;;  %v1031_v15 = vpack.c.bf16 %v1172_v10, %v1172_v10  ;;  %v362_v20 = vpop.f32.mrb[22].mxu0  ;;  %1199 = vtanh.f32 %v473_v17 }
 0x122   :  { %v1176_v18 = vpop.eup %1175  ;;  %587 = vst [vmem:[%s1599_s4 + $0x70] sm:$0xf] %v999_v11  ;;  %v1015_v19 = vpack.c.bf16 %v1174_v14, %v1174_v14  ;;  %v475_v21 = vpop.f32.mrb[22].mxu1  ;;  %1201 = vtanh.f32 %v362_v20 }
 0x123   :  { %v1178_v22 = vpop.eup %1177  ;;  %779 = vst [vmem:[%s1599_s4 + $0x78] sm:$0xf] %v1031_v15  ;;  %v1047_v23 = vpack.c.bf16 %v1176_v18, %v1176_v18  ;;  %v364_v24 = vpop.f32.mrb[23].mxu0  ;;  %1203 = vtanh.f32 %v475_v21 }
 0x124   :  { %v477_v25 = vpop.f32.mrb[23].mxu1  ;;  %v1180_v26 = vpop.eup %1179  ;;  %683 = vst [vmem:[%s1599_s4 + $0x74] sm:$0xf] %v1015_v19  ;;  %v1000_v27 = vpack.c.bf16 %v1178_v22, %v1178_v22  ;;  %1205 = vtanh.f32 %v364_v24 }
 0x125   :  { %v1182_v28 = vpop.eup %1181  ;;  %875 = vst [vmem:[%s1599_s4 + $0x7c] sm:$0xf] %v1047_v23  ;;  %v1032_v29 = vpack.c.bf16 %v1180_v26, %v1180_v26  ;;  %1207 = vtanh.f32 %v477_v25  ;;  %v368_v36 = vpop.f32.mrb[24].mxu0 }
 0x126   :  { %v1184_v30 = vpop.eup %1183  ;;  %588 = vst [vmem:[%s1599_s4 + $0x80] sm:$0xf] %v1000_v27  ;;  %v1016_v31 = vpack.c.bf16 %v1182_v28, %v1182_v28  ;;  %v481_v37 = vpop.f32.mrb[24].mxu1  ;;  %1209 = vtanh.f32 %v368_v36 }
 0x127   :  { %v1186_v32 = vpop.eup %1185  ;;  %780 = vst [vmem:[%s1599_s4 + $0x88] sm:$0xf] %v1032_v29  ;;  %v1048_v33 = vpack.c.bf16 %v1184_v30, %v1184_v30  ;;  %v370_v40 = vpop.f32.mrb[25].mxu0  ;;  %1211 = vtanh.f32 %v481_v37 }
 0x128   :  { %v1188_v34 = vpop.eup %1187  ;;  %684 = vst [vmem:[%s1599_s4 + $0x84] sm:$0xf] %v1016_v31  ;;  %v1001_v35 = vpack.c.bf16 %v1186_v32, %v1186_v32  ;;  %v483_v41 = vpop.f32.mrb[25].mxu1  ;;  %1213 = vtanh.f32 %v370_v40 }
 0x129   :  { %v1190_v38 = vpop.eup %1189  ;;  %876 = vst [vmem:[%s1599_s4 + $0x8c] sm:$0xf] %v1048_v33  ;;  %v1033_v39 = vpack.c.bf16 %v1188_v34, %v1188_v34  ;;  %v372_v44 = vpop.f32.mrb[26].mxu0  ;;  %1215 = vtanh.f32 %v483_v41 }
 0x12a   :  { %v1192_v42 = vpop.eup %1191  ;;  %589 = vst [vmem:[%s1599_s4 + $0x90] sm:$0xf] %v1001_v35  ;;  %v1017_v43 = vpack.c.bf16 %v1190_v38, %v1190_v38  ;;  %v485_v45 = vpop.f32.mrb[26].mxu1  ;;  %1217 = vtanh.f32 %v372_v44 }
 0x12b   :  { %v1194_v46 = vpop.eup %1193  ;;  %781 = vst [vmem:[%s1599_s4 + $0x98] sm:$0xf] %v1033_v39  ;;  %v1049_v47 = vpack.c.bf16 %v1192_v42, %v1192_v42  ;;  %v374_v48 = vpop.f32.mrb[27].mxu0  ;;  %1219 = vtanh.f32 %v485_v45 }
 0x12c   :  { %v487_v49 = vpop.f32.mrb[27].mxu1  ;;  %v1196_v50 = vpop.eup %1195  ;;  %685 = vst [vmem:[%s1599_s4 + $0x94] sm:$0xf] %v1017_v43  ;;  %v1002_v51 = vpack.c.bf16 %v1194_v46, %v1194_v46  ;;  %1221 = vtanh.f32 %v374_v48 }
 0x12d   :  { %v1198_v52 = vpop.eup %1197  ;;  %877 = vst [vmem:[%s1599_s4 + $0x9c] sm:$0xf] %v1049_v47  ;;  %v1034_v53 = vpack.c.bf16 %v1196_v50, %v1196_v50  ;;  %1223 = vtanh.f32 %v487_v49  ;;  %v378_v60 = vpop.f32.mrb[28].mxu0 }
 0x12e   :  { %v1200_v54 = vpop.eup %1199  ;;  %590 = vst [vmem:[%s1599_s4 + $0xa0] sm:$0xf] %v1002_v51  ;;  %v1018_v55 = vpack.c.bf16 %v1198_v52, %v1198_v52  ;;  %v491_v61 = vpop.f32.mrb[28].mxu1  ;;  %1225 = vtanh.f32 %v378_v60 }
 0x12f   :  { %v1202_v56 = vpop.eup %1201  ;;  %782 = vst [vmem:[%s1599_s4 + $0xa8] sm:$0xf] %v1034_v53  ;;  %v1050_v57 = vpack.c.bf16 %v1200_v54, %v1200_v54  ;;  %v380_v0 = vpop.f32.mrb[29].mxu0  ;;  %1227 = vtanh.f32 %v491_v61 }
 0x130   :  { %v1204_v58 = vpop.eup %1203  ;;  %686 = vst [vmem:[%s1599_s4 + $0xa4] sm:$0xf] %v1018_v55  ;;  %v1003_v59 = vpack.c.bf16 %v1202_v56, %v1202_v56  ;;  %v493_v1 = vpop.f32.mrb[29].mxu1  ;;  %1229 = vtanh.f32 %v380_v0 }
 0x131   :  { %v1206_v62 = vpop.eup %1205  ;;  %878 = vst [vmem:[%s1599_s4 + $0xac] sm:$0xf] %v1050_v57  ;;  %v1035_v63 = vpack.c.bf16 %v1204_v58, %v1204_v58  ;;  %v382_v4 = vpop.f32.mrb[30].mxu0  ;;  %1231 = vtanh.f32 %v493_v1 }
 0x132   :  { %v1208_v2 = vpop.eup %1207  ;;  %591 = vst [vmem:[%s1599_s4 + $0xb0] sm:$0xf] %v1003_v59  ;;  %v1019_v3 = vpack.c.bf16 %v1206_v62, %v1206_v62  ;;  %v495_v5 = vpop.f32.mrb[30].mxu1  ;;  %1233 = vtanh.f32 %v382_v4 }
 0x133   :  { %v1210_v6 = vpop.eup %1209  ;;  %783 = vst [vmem:[%s1599_s4 + $0xb8] sm:$0xf] %v1035_v63  ;;  %v1051_v7 = vpack.c.bf16 %v1208_v2, %v1208_v2  ;;  %v384_v8 = vpop.f32.mrb[31].mxu0  ;;  %1235 = vtanh.f32 %v495_v5 }
 0x134   :  { %v497_v9 = vpop.f32.mrb[31].mxu1  ;;  %v1212_v10 = vpop.eup %1211  ;;  %687 = vst [vmem:[%s1599_s4 + $0xb4] sm:$0xf] %v1019_v3  ;;  %v1004_v11 = vpack.c.bf16 %v1210_v6, %v1210_v6  ;;  %1237 = vtanh.f32 %v384_v8 }
 0x135   :  { %v1214_v12 = vpop.eup %1213  ;;  %879 = vst [vmem:[%s1599_s4 + $0xbc] sm:$0xf] %v1051_v7  ;;  %v1036_v13 = vpack.c.bf16 %v1212_v10, %v1212_v10  ;;  %1239 = vtanh.f32 %v497_v9 }
 0x136   :  { %v1216_v14 = vpop.eup %1215  ;;  %592 = vst [vmem:[%s1599_s4 + $0xc0] sm:$0xf] %v1004_v11  ;;  %v1020_v15 = vpack.c.bf16 %v1214_v12, %v1214_v12 }
 0x137   :  { %v1218_v16 = vpop.eup %1217  ;;  %784 = vst [vmem:[%s1599_s4 + $0xc8] sm:$0xf] %v1036_v13  ;;  %v1052_v17 = vpack.c.bf16 %v1216_v14, %v1216_v14 }
 0x138   :  { %v1220_v18 = vpop.eup %1219  ;;  %688 = vst [vmem:[%s1599_s4 + $0xc4] sm:$0xf] %v1020_v15  ;;  %v1005_v19 = vpack.c.bf16 %v1218_v16, %v1218_v16 }
 0x139   :  { %v1222_v20 = vpop.eup %1221  ;;  %880 = vst [vmem:[%s1599_s4 + $0xcc] sm:$0xf] %v1052_v17  ;;  %v1037_v21 = vpack.c.bf16 %v1220_v18, %v1220_v18 }
 0x13a   :  { %v1224_v22 = vpop.eup %1223  ;;  %593 = vst [vmem:[%s1599_s4 + $0xd0] sm:$0xf] %v1005_v19  ;;  %v1021_v23 = vpack.c.bf16 %v1222_v20, %v1222_v20 }
 0x13b   :  { %v1226_v24 = vpop.eup %1225  ;;  %785 = vst [vmem:[%s1599_s4 + $0xd8] sm:$0xf] %v1037_v21  ;;  %v1053_v25 = vpack.c.bf16 %v1224_v22, %v1224_v22 }
 0x13c   :  { %v1228_v26 = vpop.eup %1227  ;;  %689 = vst [vmem:[%s1599_s4 + $0xd4] sm:$0xf] %v1021_v23  ;;  %v1006_v27 = vpack.c.bf16 %v1226_v24, %v1226_v24 }
 0x13d   :  { %v1230_v28 = vpop.eup %1229  ;;  %881 = vst [vmem:[%s1599_s4 + $0xdc] sm:$0xf] %v1053_v25  ;;  %v1038_v29 = vpack.c.bf16 %v1228_v26, %v1228_v26 }
 0x13e   :  { %v1232_v30 = vpop.eup %1231  ;;  %594 = vst [vmem:[%s1599_s4 + $0xe0] sm:$0xf] %v1006_v27  ;;  %v1022_v31 = vpack.c.bf16 %v1230_v28, %v1230_v28 }
 0x13f   :  { %v1234_v32 = vpop.eup %1233  ;;  %786 = vst [vmem:[%s1599_s4 + $0xe8] sm:$0xf] %v1038_v29  ;;  %v1054_v33 = vpack.c.bf16 %v1232_v30, %v1232_v30 }
 0x140   :  { %v1236_v34 = vpop.eup %1235  ;;  %690 = vst [vmem:[%s1599_s4 + $0xe4] sm:$0xf] %v1022_v31  ;;  %v1007_v35 = vpack.c.bf16 %v1234_v32, %v1234_v32 }
 0x141   :  { %v1238_v36 = vpop.eup %1237  ;;  %882 = vst [vmem:[%s1599_s4 + $0xec] sm:$0xf] %v1054_v33  ;;  %v1039_v37 = vpack.c.bf16 %v1236_v34, %v1236_v34 }
 0x142   :  { %v1240_v38 = vpop.eup %1239  ;;  %595 = vst [vmem:[%s1599_s4 + $0xf0] sm:$0xf] %v1007_v35  ;;  %v1023_v39 = vpack.c.bf16 %v1238_v36, %v1238_v36 }
 0x143   :  { %787 = vst [vmem:[%s1599_s4 + $0xf8] sm:$0xf] %v1039_v37  ;;  %v1055_v40 = vpack.c.bf16 %v1240_v38, %v1240_v38 }
 0x144   :  { %691 = vst [vmem:[%s1599_s4 + $0xf4] sm:$0xf] %v1023_v39 }
 0x145   :  { %883 = vst [vmem:[%s1599_s4 + $0xfc] sm:$0xf] %v1055_v40 }

</bundles_post_ra>
